<compile_context>
chip_gen: v5e
topology: v5e:2x2
jax: 0.10.0
libtpu: 0.0.40
codegen_flags: <defaults>
</compile_context>

<pallas_src>
import math
import jax
import jax.numpy as jnp
from jax import lax
from jax.experimental import pallas as pl
from jax.experimental.pallas import tpu as pltpu


def _default_vmem_limit():
    # ~75% of physical VMEM: ~96 MiB on v5e/v6e (128 MiB phys), ~48 MiB on v7x (64 MiB).
    try:
        info = pltpu.get_tpu_info()
        cap = getattr(info, "vmem_capacity_bytes", None)
        if cap:
            return max(32 * 1024 * 1024, min(int(cap * 0.75), cap - 16 * 1024 * 1024))
    except Exception:
        pass
    return 64 * 1024 * 1024


_VMEM_LIMIT = _default_vmem_limit()


# ----------------------------------------------------------------------------- #
# helpers
# ----------------------------------------------------------------------------- #
def _softplus(x):
    # matches torch.nn.functional.softplus (threshold=20)
    return jnp.where(x > 20.0, x, jnp.log1p(jnp.exp(x)))


def _silu(x):
    return x * jax.nn.sigmoid(x)


def _round_up(x, m):
    return (x + m - 1) // m * m


def _pick_chunk(L, target):
    """Largest chunk <= target that divides L and is a multiple of 8 (else L)."""
    if L <= target:
        return L
    start = target - (target % 8)
    for d in range(start, 0, -8):
        if L % d == 0:
            return d
    return L


def _pick_channel_tile(C, target):
    """Largest 128-multiple tile <= target dividing C (else the full C)."""
    if C <= target:
        return C
    t = (target // 128) * 128
    for ct in range(t, 0, -128):
        if C % ct == 0:
            return ct
    return C


def _pick_head_block(bsz, H, P, target_lanes=256):
    """Heads per scan grid step: fill >=128 output lanes, divide H, keep >=2
    parallel grid cells when possible (v7x megacore)."""
    hb = min(H, max(1, target_lanes // P))
    while hb > 1 and H % hb != 0:
        hb -= 1
    if hb != H and (hb * P) % 128 != 0:
        hb = H                         # keep the y store lane-dense
    if bsz * (H // hb) < 2:
        for cand in range(hb - 1, 0, -1):
            if H % cand == 0 and bsz * (H // cand) >= 2:
                hb = cand
                break
    return hb


# ----------------------------------------------------------------------------- #
# tiled matmul (in_proj)
# ----------------------------------------------------------------------------- #
def _matmul_kernel(x_ref, w_ref, o_ref, acc_ref):
    @pl.when(pl.program_id(2) == 0)
    def _():
        acc_ref[...] = jnp.zeros_like(acc_ref)

    # bf16 x bf16 -> f32 accumulation on the MXU.
    acc_ref[...] += jnp.dot(x_ref[...], w_ref[...],
                            preferred_element_type=jnp.float32)

    @pl.when(pl.program_id(2) == pl.num_programs(2) - 1)
    def _():
        o_ref[...] = acc_ref[...].astype(o_ref.dtype)


def pallas_matmul(x, w, *, out_dtype=jnp.float32, tm=256, tn=256, tk=512):
    """x: (M, K), w: (K, N) -> (M, N).  Output tiles are padded to 128-multiples
    so stores stay lane-dense (unmasked vst)."""
    M, K = x.shape
    Kw, N = w.shape
    assert K == Kw
    bm = tm if M > tm else _round_up(M, 8)
    bn = tn if N > tn else _round_up(N, 128)
    bk = tk if K > tk else K
    Mp, Np, Kp = _round_up(M, bm), _round_up(N, bn), _round_up(K, bk)
    if (Mp, Kp) != (M, K):
        x = jnp.pad(x, ((0, Mp - M), (0, Kp - K)))
    if (Kp, Np) != (K, N):
        w = jnp.pad(w, ((0, Kp - K), (0, Np - N)))

    out = pl.pallas_call(
        _matmul_kernel,
        out_shape=jax.ShapeDtypeStruct((Mp, Np), out_dtype),
        grid=(Mp // bm, Np // bn, Kp // bk),
        in_specs=[
            pl.BlockSpec((bm, bk), lambda i, j, k: (i, k)),
            pl.BlockSpec((bk, bn), lambda i, j, k: (k, j)),
        ],
        out_specs=pl.BlockSpec((bm, bn), lambda i, j, k: (i, j)),
        scratch_shapes=[pltpu.VMEM((bm, bn), jnp.float32)],
        compiler_params=pltpu.CompilerParams(
            dimension_semantics=("parallel", "parallel", "arbitrary"),
            vmem_limit_bytes=_VMEM_LIMIT),
    )(x, w)
    if (Mp, Np) != (M, N):
        out = out[:M, :N]
    return out


# ----------------------------------------------------------------------------- #
# causal depthwise conv1d + SiLU
# (only a (d_conv-1, C) halo is kept in VMEM and carried across L-chunks)
# ----------------------------------------------------------------------------- #
def _conv_silu_kernel(x_ref, w_ref, b_ref, o_ref, halo_ref):
    # x/o: (Lc, Ct); w: (K, Ct); b: (1, Ct); halo scratch: (K-1, Ct) f32
    K = w_ref.shape[0]
    Lc = x_ref.shape[0]

    @pl.when(pl.program_id(2) == 0)
    def _():
        halo_ref[...] = jnp.zeros_like(halo_ref)

    x = x_ref[...].astype(jnp.float32)
    halo = halo_ref[...]
    w = w_ref[...].astype(jnp.float32)

    acc = x * w[K - 1:K, :]                       # aligned tap
    for k in range(K - 1):                        # static unroll, small conv width
        shift = K - 1 - k
        shifted = jnp.concatenate([halo[k:, :], x[:Lc - shift, :]], axis=0)
        acc = acc + shifted * w[k:k + 1, :]
    acc = acc + b_ref[...].astype(jnp.float32)
    o_ref[...] = (acc * jax.nn.sigmoid(acc)).astype(o_ref.dtype)

    # carry the last (K-1) input rows as the next chunk's halo
    halo_ref[...] = x[Lc - (K - 1):, :]


def pallas_causal_conv_silu(xBC, conv_w, conv_b, d_conv, *, l_chunk=512, c_chunk=1024):
    # xBC: (B, L, C); conv_w: (C, 1, K) torch layout; conv_b: (C,)
    B, L, C = xBC.shape
    assert d_conv >= 2
    Lc = _pick_chunk(L, l_chunk)
    Ct = _pick_channel_tile(C, c_chunk)
    wK = jnp.transpose(conv_w[:, 0, :], (1, 0))        # (K, C)
    bK = conv_b.reshape(1, C)
    return pl.pallas_call(
        _conv_silu_kernel,
        out_shape=jax.ShapeDtypeStruct((B, L, C), xBC.dtype),
        grid=(B, C // Ct, L // Lc),
        in_specs=[
            pl.BlockSpec((None, Lc, Ct), lambda b, ci, li: (b, li, ci)),
            pl.BlockSpec((d_conv, Ct), lambda b, ci, li: (0, ci)),
            pl.BlockSpec((1, Ct), lambda b, ci, li: (0, ci)),
        ],
        out_specs=pl.BlockSpec((None, Lc, Ct), lambda b, ci, li: (b, li, ci)),
        scratch_shapes=[pltpu.VMEM((d_conv - 1, Ct), jnp.float32)],
        compiler_params=pltpu.CompilerParams(
            dimension_semantics=("parallel", "parallel", "arbitrary"),
            vmem_limit_bytes=_VMEM_LIMIT),
    )(xBC, wK, bK)


# ----------------------------------------------------------------------------- #
# chunked SSD selective scan (head-blocked, bf16 operands, f32 state carry)
# ----------------------------------------------------------------------------- #
def _ssd_chunk_kernel(x_ref, B_ref, C_ref, dt_ref, cumc_ref, cumr_ref, D_ref,
                      y_ref, state_ref):
    # x/y: (Lc, Hb*P)  B/C: (Lc, N)  dt/cumc: (Hb, Lc, 1)  cumr: (Hb, 1, Lc)
    # D: (Hb, 1, 1)    state scratch: (Hb, P, N) f32 carried across L-chunks
    Hb, P, _ = state_ref.shape
    Lc = x_ref.shape[0]

    @pl.when(pl.program_id(2) == 0)
    def _():
        state_ref[...] = jnp.zeros_like(state_ref)

    xb = x_ref[...]                                                  # bf16
    Bc = B_ref[...]                                                  # (Lc, N) bf16
    Cc = C_ref[...]                                                  # (Lc, N) bf16

    # C B^T shared across all heads of this block (ngroups == 1): computed once.
    cbt = lax.dot_general(Cc, Bc, (((1,), (1,)), ((), ())),
                          preferred_element_type=jnp.float32)        # (Lc, Lc)
    row = lax.broadcasted_iota(jnp.int32, (Lc, Lc), 0)
    col = lax.broadcasted_iota(jnp.int32, (Lc, Lc), 1)
    causal = row >= col

    y_parts = []
    for h in range(Hb):                                # static unroll over heads
        x_f = xb[:, h * P:(h + 1) * P].astype(jnp.float32)           # (Lc, P)
        dt_h = dt_ref[h]                                             # (Lc, 1)
        cc = cumc_ref[h]                                             # (Lc, 1)
        cr = cumr_ref[h]                                             # (1, Lc)

        decay = jnp.exp(jnp.where(causal, cc - cr, -jnp.inf))        # (Lc, Lc)
        xdt = x_f * dt_h                                             # (Lc, P)

        # intra-chunk:  ((C B^T) * decay) @ (dt * x)  -- bf16 operands, f32 acc
        y_h = jnp.dot((cbt * decay).astype(jnp.bfloat16),
                      xdt.astype(jnp.bfloat16),
                      preferred_element_type=jnp.float32)            # (Lc, P)

        # inter-chunk: contribution of the carried state
        h_prev = state_ref[h]                                        # (P, N) f32
        y_off = lax.dot_general(Cc, h_prev.astype(jnp.bfloat16),
                                (((1,), (1,)), ((), ())),
                                preferred_element_type=jnp.float32)  # (Lc, P)
        y_h = y_h + jnp.exp(cc) * y_off + D_ref[h] * x_f
        y_parts.append(y_h)

        # state update for the next chunk (state stays f32 in VMEM)
        cum_last = cc[Lc - 1:Lc, :]                                  # (1, 1)
        xw = (xdt * jnp.exp(cum_last - cc)).astype(jnp.bfloat16)     # (Lc, P)
        new_state = lax.dot_general(xw, Bc, (((0,), (0,)), ((), ())),
                                    preferred_element_type=jnp.float32)  # (P, N)
        state_ref[h] = jnp.exp(cum_last) * h_prev + new_state

    y_full = y_parts[0] if Hb == 1 else jnp.concatenate(y_parts, axis=-1)
    y_ref[...] = y_full.astype(y_ref.dtype)            # single lane-dense store


def pallas_ssm_scan(x, dt, Bmat, Cmat, A, D, dt_bias, *, chunk, nheads, headdim):
    # x: (b, L, H*P) bf16, dt: (b, L, H), Bmat/Cmat: (b, L, N)   (ngroups == 1)
    bsz, L, d_ssm = x.shape
    H, P = nheads, headdim
    N = Bmat.shape[-1]
    assert d_ssm == H * P and L % chunk == 0
    Lc = chunk
    nC = L // Lc
    Hb = _pick_head_block(bsz, H, P)
    nHb = H // Hb

    # tiny per-head tensors: softplus, dt*A, per-chunk inclusive cumsum hoisted.
    # head-major 5-D layouts so the kernel slices (Lc,1)/(1,Lc) per head with
    # static leading-axis indexing (no dynamic lane slicing, no broadcasts of
    # per-head scalars over the full sequence).
    dt_sp = _softplus(dt.astype(jnp.float32) +
                      dt_bias.astype(jnp.float32)[None, None, :])    # (b, L, H)
    dA = dt_sp * A.astype(jnp.float32)[None, None, :]
    dt_h = jnp.transpose(dt_sp, (0, 2, 1)).reshape(bsz, H, nC, Lc)
    dA_h = jnp.transpose(dA, (0, 2, 1)).reshape(bsz, H, nC, Lc)
    cum_h = jnp.cumsum(dA_h, axis=-1)
    dt_col = dt_h[..., None]                          # (b, H, nC, Lc, 1)
    cum_col = cum_h[..., None]                        # (b, H, nC, Lc, 1)
    cum_row = cum_h[:, :, :, None, :]                 # (b, H, nC, 1, Lc)
    D3 = D.astype(jnp.float32).reshape(H, 1, 1)

    y = pl.pallas_call(
        _ssd_chunk_kernel,
        out_shape=jax.ShapeDtypeStruct((bsz, L, d_ssm), jnp.bfloat16),
        grid=(bsz, nHb, nC),
        in_specs=[
            pl.BlockSpec((None, Lc, Hb * P), lambda b, hb, c: (b, c, hb)),
            pl.BlockSpec((None, Lc, N), lambda b, hb, c: (b, c, 0)),
            pl.BlockSpec((None, Lc, N), lambda b, hb, c: (b, c, 0)),
            pl.BlockSpec((None, Hb, None, Lc, 1), lambda b, hb, c: (b, hb, c, 0, 0)),
            pl.BlockSpec((None, Hb, None, Lc, 1), lambda b, hb, c: (b, hb, c, 0, 0)),
            pl.BlockSpec((None, Hb, None, 1, Lc), lambda b, hb, c: (b, hb, c, 0, 0)),
            pl.BlockSpec((Hb, 1, 1), lambda b, hb, c: (hb, 0, 0)),
        ],
        out_specs=pl.BlockSpec((None, Lc, Hb * P), lambda b, hb, c: (b, c, hb)),
        scratch_shapes=[pltpu.VMEM((Hb, P, N), jnp.float32)],
        compiler_params=pltpu.CompilerParams(
            dimension_semantics=("parallel", "parallel", "arbitrary"),
            vmem_limit_bytes=_VMEM_LIMIT),
    )(x, Bmat, Cmat, dt_col, cum_col, cum_row, D3)
    return y                                          # (b, L, d_ssm) bf16


# ----------------------------------------------------------------------------- #
# gated RMSNorm fused with out_proj (normalized activation computed once/row tile)
# ----------------------------------------------------------------------------- #
def _rmsnorm_outproj_kernel(y_ref, z_ref, nw_ref, w_ref, o_ref, gn_ref):
    # y/z: (bm, Dssm), nw: (1, Dssm), w: (Dssm, bn), o: (bm, bn), gn scratch (bm, Dssm)
    # norm_before_gate=False -> gate first, then RMSNorm, then out_proj.
    @pl.when(pl.program_id(1) == 0)
    def _():
        y = y_ref[...].astype(jnp.float32)
        z = z_ref[...].astype(jnp.float32)
        g = y * (z * jax.nn.sigmoid(z))
        var = jnp.mean(g * g, axis=-1, keepdims=True)
        gn_ref[...] = (g * lax.rsqrt(var + 1e-5)
                       * nw_ref[...].astype(jnp.float32)).astype(gn_ref.dtype)

    o_ref[...] = jnp.dot(gn_ref[...], w_ref[...],
                         preferred_element_type=jnp.float32).astype(o_ref.dtype)


def pallas_rmsnorm_out_proj(y, z, norm_w, wT, *, out_dtype=jnp.float32,
                            tm=128, tn=256):
    M, Dssm = y.shape
    _, N = wT.shape
    bm = tm if M > tm else _round_up(M, 8)
    bn = tn if N > tn else _round_up(N, 128)
    Mp, Np = _round_up(M, bm), _round_up(N, bn)
    if Mp != M:
        y = jnp.pad(y, ((0, Mp - M), (0, 0)))
        z = jnp.pad(z, ((0, Mp - M), (0, 0)))
    if Np != N:
        wT = jnp.pad(wT, ((0, 0), (0, Np - N)))

    out = pl.pallas_call(
        _rmsnorm_outproj_kernel,
        out_shape=jax.ShapeDtypeStruct((Mp, Np), out_dtype),
        grid=(Mp // bm, Np // bn),
        in_specs=[
            pl.BlockSpec((bm, Dssm), lambda i, j: (i, 0)),
            pl.BlockSpec((bm, Dssm), lambda i, j: (i, 0)),
            pl.BlockSpec((1, Dssm), lambda i, j: (0, 0)),
            pl.BlockSpec((Dssm, bn), lambda i, j: (0, j)),
        ],
        out_specs=pl.BlockSpec((bm, bn), lambda i, j: (i, j)),
        scratch_shapes=[pltpu.VMEM((bm, Dssm), wT.dtype)],
        compiler_params=pltpu.CompilerParams(
            # j must stay "arbitrary": the gn scratch is filled at j == 0
            dimension_semantics=("parallel", "arbitrary"),
            vmem_limit_bytes=_VMEM_LIMIT),
    )(y, z, norm_w.reshape(1, Dssm), wT)
    if (Mp, Np) != (M, N):
        out = out[:M, :N]
    return out


# ----------------------------------------------------------------------------- #
# Mamba2 forward (Pallas) and pure-JAX reference
# ----------------------------------------------------------------------------- #
def mamba2_forward(u, params, cfg):
    batch, seqlen, d_model = u.shape
    d_ssm, ngroups, d_state = cfg["d_ssm"], cfg["ngroups"], cfg["d_state"]
    nheads, headdim, d_conv = cfg["nheads"], cfg["headdim"], cfg["d_conv"]
    assert ngroups == 1, "kernel assumes ngroups == 1 (shared B/C across heads)"

    # in_proj (bias=False): bf16 operands, f32 accumulation, bf16 activation out
    zxbcdt = pallas_matmul(u.reshape(batch * seqlen, d_model).astype(jnp.bfloat16),
                           params["in_proj_wT"], out_dtype=jnp.bfloat16)
    d_in_proj = zxbcdt.shape[-1]
    zxbcdt = zxbcdt.reshape(batch, seqlen, d_in_proj)
    d_mlp = (d_in_proj - 2 * d_ssm - 2 * ngroups * d_state - nheads) // 2
    # TODO(synk): d_mlp > 0 (extra silu(z0)*x0 MLP branch when d_ssm < d_inner) not
    # implemented; this configuration gives d_mlp == 0.
    assert d_mlp == 0

    # pad seqlen so the scan chunk always divides it (causal => padding is inert)
    chunk = _round_up(min(seqlen, cfg.get("chunk_size", 256)), 8)
    Lp = _round_up(seqlen, chunk)
    if Lp != seqlen:
        zxbcdt = jnp.pad(zxbcdt, ((0, 0), (0, Lp - seqlen), (0, 0)))

    z = zxbcdt[..., :d_ssm]
    xBC = zxbcdt[..., d_ssm:2 * d_ssm + 2 * ngroups * d_state]
    dt = zxbcdt[..., d_in_proj - nheads:]

    # causal depthwise conv1d + SiLU (bf16 stream)
    xBC = pallas_causal_conv_silu(xBC, params["conv_w"], params["conv_b"], d_conv,
                                  l_chunk=cfg.get("conv_chunk", 512))

    x = xBC[..., :d_ssm]
    Bmat = xBC[..., d_ssm:d_ssm + ngroups * d_state]
    Cmat = xBC[..., d_ssm + ngroups * d_state:]

    A = -jnp.exp(params["A_log"].astype(jnp.float32))
    y = pallas_ssm_scan(x, dt, Bmat, Cmat, A, params["D"], params["dt_bias"],
                        chunk=chunk, nheads=nheads, headdim=headdim)   # (b, Lp, d_ssm) bf16

    # gated RMSNorm (rmsnorm=True, norm_before_gate=False) fused with out_proj
    out = pallas_rmsnorm_out_proj(
        y.reshape(batch * Lp, d_ssm), z.reshape(batch * Lp, d_ssm),
        params["norm_w"], params["out_proj_wT"], out_dtype=u.dtype)
    out = out.reshape(batch, Lp, d_model)
    if Lp != seqlen:
        out = out[:, :seqlen]
    return out


def mamba2_reference(u, params, cfg):
    """Pure-JAX reference (sequential f32 scan) matching the kernel's bf16
    activation-quantization points."""
    batch, seqlen, d_model = u.shape
    d_ssm, ngroups, d_state = cfg["d_ssm"], cfg["ngroups"], cfg["d_state"]
    nheads, headdim, d_conv = cfg["nheads"], cfg["headdim"], cfg["d_conv"]

    zxbcdt = jnp.einsum("bld,de->ble", u.astype(jnp.bfloat16), params["in_proj_wT"],
                        preferred_element_type=jnp.float32).astype(jnp.bfloat16)
    z = zxbcdt[..., :d_ssm].astype(jnp.float32)
    xBC = zxbcdt[..., d_ssm:2 * d_ssm + 2 * ngroups * d_state].astype(jnp.float32)
    dt = zxbcdt[..., -nheads:].astype(jnp.float32)

    # causal depthwise conv + silu
    w = params["conv_w"][:, 0, :]  # (C, K)
    xpad = jnp.pad(xBC, ((0, 0), (d_conv - 1, 0), (0, 0)))
    conv = sum(xpad[:, k:k + seqlen, :] * w[:, k][None, None, :] for k in range(d_conv))
    conv = conv + params["conv_b"][None, None, :]
    xBC = _silu(conv).astype(jnp.bfloat16).astype(jnp.float32)

    x = xBC[..., :d_ssm].reshape(batch, seqlen, nheads, headdim)
    Bm = xBC[..., d_ssm:d_ssm + d_state]
    Cm = xBC[..., d_ssm + d_state:]

    A = -jnp.exp(params["A_log"].astype(jnp.float32))
    dt_sp = _softplus(dt + params["dt_bias"][None, None, :])          # (b, L, H)
    dA = jnp.exp(dt_sp * A[None, None, :])

    def step(h, inp):
        dA_t, dt_t, x_t, B_t, C_t = inp
        h = h * dA_t[:, :, None, None] + (dt_t[:, :, None, None] * x_t[..., None]) * B_t[:, None, None, :]
        y_t = jnp.einsum("bhpn,bn->bhp", h, C_t) + params["D"][None, :, None] * x_t
        return h, y_t

    h0 = jnp.zeros((batch, nheads, headdim, d_state), jnp.float32)
    _, ys = lax.scan(step, h0, (
        jnp.moveaxis(dA, 1, 0), jnp.moveaxis(dt_sp, 1, 0),
        jnp.moveaxis(x, 1, 0), jnp.moveaxis(Bm, 1, 0), jnp.moveaxis(Cm, 1, 0)))
    y = jnp.moveaxis(ys, 0, 1).reshape(batch, seqlen, d_ssm)
    y = y.astype(jnp.bfloat16).astype(jnp.float32)       # kernel streams y in bf16

    g = y * _silu(z)
    var = jnp.mean(g * g, axis=-1, keepdims=True)
    yn = g * lax.rsqrt(var + 1e-5) * params["norm_w"][None, None, :]

    out = jnp.einsum("bld,de->ble", yn.astype(jnp.bfloat16), params["out_proj_wT"],
                     preferred_element_type=jnp.float32)
    return out


# ----------------------------------------------------------------------------- #
# main
# ----------------------------------------------------------------------------- #
if __name__ == "__main__":
    # small config consistent with Mamba2.__init__
    d_model, d_state, d_conv, expand, headdim, ngroups = 32, 16, 4, 2, 16, 1
    d_inner = expand * d_model            # 64
    d_ssm = d_inner                       # 64
    nheads = d_ssm // headdim             # 4
    conv_dim = d_ssm + 2 * ngroups * d_state                   # 96
    d_in_proj = 2 * d_inner + 2 * ngroups * d_state + nheads   # 164
    batch, seqlen = 2, 16
    dt_min, dt_max, dt_init_floor = 0.001, 0.1, 1e-4

    # small chunk sizes so the inter-chunk state / conv-halo carry paths are exercised
    cfg = dict(d_ssm=d_ssm, ngroups=ngroups, d_state=d_state, nheads=nheads,
               headdim=headdim, d_conv=d_conv, chunk_size=8, conv_chunk=8)

    key = jax.random.PRNGKey(0)
    ks = jax.random.split(key, 8)
    # deterministic synthetic parameter init (shapes follow Mamba2.__init__)
    in_proj_w = jax.random.normal(ks[0], (d_in_proj, d_model), jnp.float32) * 0.05
    conv_w = jax.random.normal(ks[1], (conv_dim, 1, d_conv), jnp.float32) * 0.2
    conv_b = jax.random.normal(ks[2], (conv_dim,), jnp.float32) * 0.1
    dt0 = jnp.exp(jax.random.uniform(ks[3], (nheads,), jnp.float32)
                  * (math.log(dt_max) - math.log(dt_min)) + math.log(dt_min))
    dt0 = jnp.clip(dt0, dt_init_floor)
    dt_bias = dt0 + jnp.log(-jnp.expm1(-dt0))
    A_log = jnp.log(jax.random.uniform(ks[4], (nheads,), jnp.float32, minval=1.0, maxval=16.0))
    Dparam = jnp.ones((nheads,), jnp.float32)
    norm_w = jnp.ones((d_ssm,), jnp.float32)
    out_proj_w = jax.random.normal(ks[5], (d_model, d_inner), jnp.float32) * 0.05

    params = dict(
        # projection weights stored pre-transposed (K, N) and in bf16 for the MXU
        in_proj_wT=in_proj_w.T.astype(jnp.bfloat16),
        out_proj_wT=out_proj_w.T.astype(jnp.bfloat16),
        conv_w=conv_w, conv_b=conv_b,
        dt_bias=dt_bias, A_log=A_log, D=Dparam, norm_w=norm_w)

    u = jax.random.normal(ks[6], (batch, seqlen, d_model), jnp.float32)

    fwd = jax.jit(lambda uu: mamba2_forward(uu, params, cfg))
    out = jax.block_until_ready(fwd(u))

    ref = jax.block_until_ready(mamba2_reference(u, params, cfg))
    assert out.shape == (batch, seqlen, d_model)
    # bf16 operands inside the SSD matmuls (f32 accumulation) vs the f32 sequential
    # reference -> relaxed tolerance.
    assert bool(jnp.allclose(out, ref, atol=2e-2, rtol=2e-2)), "mismatch vs reference"

    print("KERNEL_OK")
</pallas_src>

<mosaic_0001>
module attributes {stable_mosaic.version = 11 : i64} {
  func.func @_matmul_kernel(%arg0: i32, %arg1: i32, %arg2: i32, %arg3: memref<32x32xbf16, #tpu.memory_space<vmem>>, %arg4: memref<32x256xbf16, #tpu.memory_space<vmem>>, %arg5: memref<32x256xbf16, #tpu.memory_space<vmem>>, %arg6: memref<32x256xf32, #tpu.memory_space<vmem>>) attributes {dimension_semantics = [#tpu.dimension_semantics<parallel>, #tpu.dimension_semantics<parallel>, #tpu.dimension_semantics<arbitrary>], iteration_bounds = array<i64: 1, 1, 1>, scalar_prefetch = 0 : i64, scratch_operands = 1 : i64, tpu.core_type = #tpu.core_type<tc>, window_params = [{transform_indices = @transform_0, window_bounds = array<i64: 32, 32>}, {transform_indices = @transform_1, window_bounds = array<i64: 32, 256>}, {transform_indices = @transform_2, window_bounds = array<i64: 32, 256>}]} {
    %c0_i32 = arith.constant 0 : i32
    %0 = arith.cmpi eq, %arg2, %c0_i32 : i32
    %1 = arith.extui %0 : i1 to i32
    %c0_i32_0 = arith.constant 0 : i32
    %2 = arith.cmpi ne, %1, %c0_i32_0 : i32
    scf.if %2 {
      %cst_10 = arith.constant 0.000000e+00 : f32
      %12 = vector.broadcast %cst_10 : f32 to vector<32x256xf32>
      %c0_11 = arith.constant 0 : index
      %c0_12 = arith.constant 0 : index
      %13 = vector.load %arg6[%c0_11, %c0_12] : memref<32x256xf32, #tpu.memory_space<vmem>>, vector<32x256xf32>
      tpu.vector_store %arg6[%c0_11, %c0_12], %12 {strides = array<i32>} : memref<32x256xf32, #tpu.memory_space<vmem>>, vector<32x256xf32>,
    } else {
    }
    %c0 = arith.constant 0 : index
    %c0_1 = arith.constant 0 : index
    %3 = vector.load %arg6[%c0, %c0_1] : memref<32x256xf32, #tpu.memory_space<vmem>>, vector<32x256xf32>
    %c0_2 = arith.constant 0 : index
    %c0_3 = arith.constant 0 : index
    %4 = vector.load %arg3[%c0_2, %c0_3] : memref<32x32xbf16, #tpu.memory_space<vmem>>, vector<32x32xbf16>
    %c0_4 = arith.constant 0 : index
    %c0_5 = arith.constant 0 : index
    %5 = vector.load %arg4[%c0_4, %c0_5] : memref<32x256xbf16, #tpu.memory_space<vmem>>, vector<32x256xbf16>
    %cst = arith.constant dense<0.000000e+00> : vector<32x256xf32>
    %6 = tpu.matmul %4, %5, %cst {dimension_numbers = #tpu.dot_dimension_numbers<[1], [0], [0], [1], [0, 0, 1, 1], [], []>} : vector<32x32xbf16>, vector<32x256xbf16>, vector<32x256xf32> -> vector<32x256xf32>
    %7 = arith.addf %3, %6 : vector<32x256xf32>
    %c0_6 = arith.constant 0 : index
    %c0_7 = arith.constant 0 : index
    %8 = vector.load %arg6[%c0_6, %c0_7] : memref<32x256xf32, #tpu.memory_space<vmem>>, vector<32x256xf32>
    tpu.vector_store %arg6[%c0_6, %c0_7], %7 {strides = array<i32>} : memref<32x256xf32, #tpu.memory_space<vmem>>, vector<32x256xf32>,
    %c0_i32_8 = arith.constant 0 : i32
    %9 = arith.cmpi eq, %arg2, %c0_i32_8 : i32
    %10 = arith.extui %9 : i1 to i32
    %c0_i32_9 = arith.constant 0 : i32
    %11 = arith.cmpi ne, %10, %c0_i32_9 : i32
    scf.if %11 {
      %c0_10 = arith.constant 0 : index
      %c0_11 = arith.constant 0 : index
      %12 = vector.load %arg6[%c0_10, %c0_11] : memref<32x256xf32, #tpu.memory_space<vmem>>, vector<32x256xf32>
      %13 = arith.truncf %12 : vector<32x256xf32> to vector<32x256xbf16>
      %c0_12 = arith.constant 0 : index
      %c0_13 = arith.constant 0 : index
      %14 = vector.load %arg5[%c0_12, %c0_13] : memref<32x256xbf16, #tpu.memory_space<vmem>>, vector<32x256xbf16>
      tpu.vector_store %arg5[%c0_12, %c0_13], %13 {strides = array<i32>} : memref<32x256xbf16, #tpu.memory_space<vmem>>, vector<32x256xbf16>,
    } else {
    }
    return
  }
  func.func @transform_0(%arg0: i32, %arg1: i32, %arg2: i32) -> (i32, i32) {
    %c0_i32 = arith.constant 0 : i32
    return %arg0, %arg2 : i32, i32
  }
  func.func @transform_1(%arg0: i32, %arg1: i32, %arg2: i32) -> (i32, i32) {
    %c0_i32 = arith.constant 0 : i32
    return %arg2, %arg1 : i32, i32
  }
  func.func @transform_2(%arg0: i32, %arg1: i32, %arg2: i32) -> (i32, i32) {
    %c0_i32 = arith.constant 0 : i32
    return %arg0, %arg1 : i32, i32
  }
}

module attributes {stable_mosaic.version = 11 : i64} {
  func.func @_conv_silu_kernel(%arg0: i32, %arg1: i32, %arg2: i32, %arg3: memref<1x8x96xbf16, #tpu.memory_space<vmem>>, %arg4: memref<4x96xf32, #tpu.memory_space<vmem>>, %arg5: memref<1x96xf32, #tpu.memory_space<vmem>>, %arg6: memref<1x8x96xbf16, #tpu.memory_space<vmem>>, %arg7: memref<3x96xf32, #tpu.memory_space<vmem>>) attributes {dimension_semantics = [#tpu.dimension_semantics<parallel>, #tpu.dimension_semantics<parallel>, #tpu.dimension_semantics<arbitrary>], iteration_bounds = array<i64: 2, 1, 2>, scalar_prefetch = 0 : i64, scratch_operands = 1 : i64, tpu.core_type = #tpu.core_type<tc>, window_params = [{transform_indices = @transform_0, window_bounds = array<i64: 1, 8, 96>}, {transform_indices = @transform_1, window_bounds = array<i64: 4, 96>}, {transform_indices = @transform_2, window_bounds = array<i64: 1, 96>}, {transform_indices = @transform_3, window_bounds = array<i64: 1, 8, 96>}]} {
    %c0_i32 = arith.constant 0 : i32
    %0 = arith.cmpi eq, %arg2, %c0_i32 : i32
    %1 = arith.extui %0 : i1 to i32
    %c0_i32_0 = arith.constant 0 : i32
    %2 = arith.cmpi ne, %1, %c0_i32_0 : i32
    scf.if %2 {
      %cst_14 = arith.constant 0.000000e+00 : f32
      %46 = vector.broadcast %cst_14 : f32 to vector<3x96xf32>
      %c0_15 = arith.constant 0 : index
      %c0_16 = arith.constant 0 : index
      %47 = vector.load %arg7[%c0_15, %c0_16] : memref<3x96xf32, #tpu.memory_space<vmem>>, vector<3x96xf32>
      tpu.vector_store %arg7[%c0_15, %c0_16], %46 {strides = array<i32>} : memref<3x96xf32, #tpu.memory_space<vmem>>, vector<3x96xf32>,
    } else {
    }
    %c0 = arith.constant 0 : index
    %c0_1 = arith.constant 0 : index
    %c0_2 = arith.constant 0 : index
    %3 = vector.load %arg3[%c0, %c0_1, %c0_2] : memref<1x8x96xbf16, #tpu.memory_space<vmem>>, vector<1x8x96xbf16>
    %4 = vector.shape_cast %3 : vector<1x8x96xbf16> to vector<8x96xbf16>
    %5 = arith.extf %4 : vector<8x96xbf16> to vector<8x96xf32>
    %c0_3 = arith.constant 0 : index
    %c0_4 = arith.constant 0 : index
    %6 = vector.load %arg7[%c0_3, %c0_4] : memref<3x96xf32, #tpu.memory_space<vmem>>, vector<3x96xf32>
    %c0_5 = arith.constant 0 : index
    %c0_6 = arith.constant 0 : index
    %7 = vector.load %arg4[%c0_5, %c0_6] : memref<4x96xf32, #tpu.memory_space<vmem>>, vector<4x96xf32>
    %8 = vector.extract_strided_slice %7 {offsets = [3, 0], sizes = [1, 96], strides = [1, 1]} : vector<4x96xf32> to vector<1x96xf32>
    %9 = vector.broadcast %8 : vector<1x96xf32> to vector<8x96xf32>
    %10 = arith.mulf %5, %9 : vector<8x96xf32>
    %11 = vector.extract_strided_slice %5 {offsets = [0, 0], sizes = [5, 96], strides = [1, 1]} : vector<8x96xf32> to vector<5x96xf32>
    %12 = tpu.concatenate %6, %11 in 0 : vector<3x96xf32>, vector<5x96xf32> -> vector<8x96xf32>
    %13 = vector.extract_strided_slice %7 {offsets = [0, 0], sizes = [1, 96], strides = [1, 1]} : vector<4x96xf32> to vector<1x96xf32>
    %14 = vector.broadcast %13 : vector<1x96xf32> to vector<8x96xf32>
    %15 = arith.mulf %12, %14 : vector<8x96xf32>
    %16 = arith.addf %10, %15 : vector<8x96xf32>
    %17 = vector.extract_strided_slice %6 {offsets = [1, 0], sizes = [2, 96], strides = [1, 1]} : vector<3x96xf32> to vector<2x96xf32>
    %18 = vector.extract_strided_slice %5 {offsets = [0, 0], sizes = [6, 96], strides = [1, 1]} : vector<8x96xf32> to vector<6x96xf32>
    %19 = tpu.concatenate %17, %18 in 0 : vector<2x96xf32>, vector<6x96xf32> -> vector<8x96xf32>
    %20 = vector.extract_strided_slice %7 {offsets = [1, 0], sizes = [1, 96], strides = [1, 1]} : vector<4x96xf32> to vector<1x96xf32>
    %21 = vector.broadcast %20 : vector<1x96xf32> to vector<8x96xf32>
    %22 = arith.mulf %19, %21 : vector<8x96xf32>
    %23 = arith.addf %16, %22 : vector<8x96xf32>
    %24 = vector.extract_strided_slice %6 {offsets = [2, 0], sizes = [1, 96], strides = [1, 1]} : vector<3x96xf32> to vector<1x96xf32>
    %25 = vector.extract_strided_slice %5 {offsets = [0, 0], sizes = [7, 96], strides = [1, 1]} : vector<8x96xf32> to vector<7x96xf32>
    %26 = tpu.concatenate %24, %25 in 0 : vector<1x96xf32>, vector<7x96xf32> -> vector<8x96xf32>
    %27 = vector.extract_strided_slice %7 {offsets = [2, 0], sizes = [1, 96], strides = [1, 1]} : vector<4x96xf32> to vector<1x96xf32>
    %28 = vector.broadcast %27 : vector<1x96xf32> to vector<8x96xf32>
    %29 = arith.mulf %26, %28 : vector<8x96xf32>
    %30 = arith.addf %23, %29 : vector<8x96xf32>
    %c0_7 = arith.constant 0 : index
    %c0_8 = arith.constant 0 : index
    %31 = vector.load %arg5[%c0_7, %c0_8] : memref<1x96xf32, #tpu.memory_space<vmem>>, vector<1x96xf32>
    %32 = vector.broadcast %31 : vector<1x96xf32> to vector<8x96xf32>
    %33 = arith.addf %30, %32 : vector<8x96xf32>
    %34 = arith.negf %33 : vector<8x96xf32>
    %35 = math.exp %34 : vector<8x96xf32>
    %cst = arith.constant 1.000000e+00 : f32
    %36 = vector.broadcast %cst : f32 to vector<8x96xf32>
    %37 = arith.addf %36, %35 : vector<8x96xf32>
    %38 = arith.divf %36, %37 : vector<8x96xf32>
    %39 = arith.mulf %33, %38 : vector<8x96xf32>
    %40 = arith.truncf %39 : vector<8x96xf32> to vector<8x96xbf16>
    %c0_9 = arith.constant 0 : index
    %c0_10 = arith.constant 0 : index
    %c0_11 = arith.constant 0 : index
    %41 = vector.load %arg6[%c0_9, %c0_10, %c0_11] : memref<1x8x96xbf16, #tpu.memory_space<vmem>>, vector<1x8x96xbf16>
    %42 = vector.shape_cast %41 : vector<1x8x96xbf16> to vector<8x96xbf16>
    %43 = vector.shape_cast %40 : vector<8x96xbf16> to vector<1x8x96xbf16>
    tpu.vector_store %arg6[%c0_9, %c0_10, %c0_11], %43 {strides = array<i32>} : memref<1x8x96xbf16, #tpu.memory_space<vmem>>, vector<1x8x96xbf16>,
    %44 = vector.extract_strided_slice %5 {offsets = [5, 0], sizes = [3, 96], strides = [1, 1]} : vector<8x96xf32> to vector<3x96xf32>
    %c0_12 = arith.constant 0 : index
    %c0_13 = arith.constant 0 : index
    %45 = vector.load %arg7[%c0_12, %c0_13] : memref<3x96xf32, #tpu.memory_space<vmem>>, vector<3x96xf32>
    tpu.vector_store %arg7[%c0_12, %c0_13], %44 {strides = array<i32>} : memref<3x96xf32, #tpu.memory_space<vmem>>, vector<3x96xf32>,
    return
  }
  func.func @transform_0(%arg0: i32, %arg1: i32, %arg2: i32) -> (i32, i32, i32) {
    %c0_i32 = arith.constant 0 : i32
    return %arg0, %arg2, %arg1 : i32, i32, i32
  }
  func.func @transform_1(%arg0: i32, %arg1: i32, %arg2: i32) -> (i32, i32) {
    %c0_i32 = arith.constant 0 : i32
    %c0_i32_0 = arith.constant 0 : i32
    return %c0_i32, %arg1 : i32, i32
  }
  func.func @transform_2(%arg0: i32, %arg1: i32, %arg2: i32) -> (i32, i32) {
    %c0_i32 = arith.constant 0 : i32
    %c0_i32_0 = arith.constant 0 : i32
    return %c0_i32, %arg1 : i32, i32
  }
  func.func @transform_3(%arg0: i32, %arg1: i32, %arg2: i32) -> (i32, i32, i32) {
    %c0_i32 = arith.constant 0 : i32
    return %arg0, %arg2, %arg1 : i32, i32, i32
  }
}

module attributes {stable_mosaic.version = 11 : i64} {
  func.func @_ssd_chunk_kernel(%arg0: i32, %arg1: i32, %arg2: i32, %arg3: memref<1x8x64xbf16, #tpu.memory_space<vmem>>, %arg4: memref<1x8x16xbf16, #tpu.memory_space<vmem>>, %arg5: memref<1x8x16xbf16, #tpu.memory_space<vmem>>, %arg6: memref<1x4x1x8x1xf32, #tpu.memory_space<vmem>>, %arg7: memref<1x4x1x8x1xf32, #tpu.memory_space<vmem>>, %arg8: memref<1x4x1x1x8xf32, #tpu.memory_space<vmem>>, %arg9: memref<4x1x1xf32, #tpu.memory_space<vmem>>, %arg10: memref<1x8x64xbf16, #tpu.memory_space<vmem>>, %arg11: memref<4x16x16xf32, #tpu.memory_space<vmem>>) attributes {dimension_semantics = [#tpu.dimension_semantics<parallel>, #tpu.dimension_semantics<parallel>, #tpu.dimension_semantics<arbitrary>], iteration_bounds = array<i64: 2, 1, 2>, scalar_prefetch = 0 : i64, scratch_operands = 1 : i64, tpu.core_type = #tpu.core_type<tc>, window_params = [{transform_indices = @transform_0, window_bounds = array<i64: 1, 8, 64>}, {transform_indices = @transform_1, window_bounds = array<i64: 1, 8, 16>}, {transform_indices = @transform_2, window_bounds = array<i64: 1, 8, 16>}, {transform_indices = @transform_3, window_bounds = array<i64: 1, 4, 1, 8, 1>}, {transform_indices = @transform_4, window_bounds = array<i64: 1, 4, 1, 8, 1>}, {transform_indices = @transform_5, window_bounds = array<i64: 1, 4, 1, 1, 8>}, {transform_indices = @transform_6, window_bounds = array<i64: 4, 1, 1>}, {transform_indices = @transform_7, window_bounds = array<i64: 1, 8, 64>}]} {
    %c0_i32 = arith.constant 0 : i32
    %0 = arith.cmpi eq, %arg2, %c0_i32 : i32
    %1 = arith.extui %0 : i1 to i32
    %c0_i32_0 = arith.constant 0 : i32
    %2 = arith.cmpi ne, %1, %c0_i32_0 : i32
    scf.if %2 {
      %cst_121 = arith.constant 0.000000e+00 : f32
      %210 = vector.broadcast %cst_121 : f32 to vector<4x16x16xf32>
      %c0_122 = arith.constant 0 : index
      %c0_123 = arith.constant 0 : index
      %c0_124 = arith.constant 0 : index
      %211 = vector.load %arg11[%c0_122, %c0_123, %c0_124] : memref<4x16x16xf32, #tpu.memory_space<vmem>>, vector<4x16x16xf32>
      tpu.vector_store %arg11[%c0_122, %c0_123, %c0_124], %210 {strides = array<i32>} : memref<4x16x16xf32, #tpu.memory_space<vmem>>, vector<4x16x16xf32>,
    } else {
    }
    %c0 = arith.constant 0 : index
    %c0_1 = arith.constant 0 : index
    %c0_2 = arith.constant 0 : index
    %3 = vector.load %arg3[%c0, %c0_1, %c0_2] : memref<1x8x64xbf16, #tpu.memory_space<vmem>>, vector<1x8x64xbf16>
    %4 = vector.shape_cast %3 : vector<1x8x64xbf16> to vector<8x64xbf16>
    %c0_3 = arith.constant 0 : index
    %c0_4 = arith.constant 0 : index
    %c0_5 = arith.constant 0 : index
    %5 = vector.load %arg4[%c0_3, %c0_4, %c0_5] : memref<1x8x16xbf16, #tpu.memory_space<vmem>>, vector<1x8x16xbf16>
    %6 = vector.shape_cast %5 : vector<1x8x16xbf16> to vector<8x16xbf16>
    %c0_6 = arith.constant 0 : index
    %c0_7 = arith.constant 0 : index
    %c0_8 = arith.constant 0 : index
    %7 = vector.load %arg5[%c0_6, %c0_7, %c0_8] : memref<1x8x16xbf16, #tpu.memory_space<vmem>>, vector<1x8x16xbf16>
    %8 = vector.shape_cast %7 : vector<1x8x16xbf16> to vector<8x16xbf16>
    %cst = arith.constant dense<0.000000e+00> : vector<8x8xf32>
    %9 = tpu.matmul %8, %6, %cst {dimension_numbers = #tpu.dot_dimension_numbers<[1], [1], [0], [0], [0, 0, 1, 0], [], []>} : vector<8x16xbf16>, vector<8x16xbf16>, vector<8x8xf32> -> vector<8x8xf32>
    %10 = tpu.iota {dimensions = array<i32: 0>} : vector<8x8xi32>
    %11 = tpu.iota {dimensions = array<i32: 1>} : vector<8x8xi32>
    %12 = arith.cmpi sge, %10, %11 : vector<8x8xi32>
    %13 = vector.extract_strided_slice %4 {offsets = [0, 0], sizes = [8, 16], strides = [1, 1]} : vector<8x64xbf16> to vector<8x16xbf16>
    %14 = arith.extf %13 : vector<8x16xbf16> to vector<8x16xf32>
    %c0_9 = arith.constant 0 : index
    %c0_10 = arith.constant 0 : index
    %c0_11 = arith.constant 0 : index
    %c0_12 = arith.constant 0 : index
    %c0_13 = arith.constant 0 : index
    %15 = vector.load %arg6[%c0_9, %c0_10, %c0_11, %c0_12, %c0_13] : memref<1x4x1x8x1xf32, #tpu.memory_space<vmem>>, vector<1x1x1x8x1xf32>
    %16 = vector.shape_cast %15 : vector<1x1x1x8x1xf32> to vector<8x1xf32>
    %c0_14 = arith.constant 0 : index
    %c0_15 = arith.constant 0 : index
    %c0_16 = arith.constant 0 : index
    %c0_17 = arith.constant 0 : index
    %c0_18 = arith.constant 0 : index
    %17 = vector.load %arg7[%c0_14, %c0_15, %c0_16, %c0_17, %c0_18] : memref<1x4x1x8x1xf32, #tpu.memory_space<vmem>>, vector<1x1x1x8x1xf32>
    %18 = vector.shape_cast %17 : vector<1x1x1x8x1xf32> to vector<8x1xf32>
    %c0_19 = arith.constant 0 : index
    %c0_20 = arith.constant 0 : index
    %c0_21 = arith.constant 0 : index
    %c0_22 = arith.constant 0 : index
    %c0_23 = arith.constant 0 : index
    %19 = vector.load %arg8[%c0_19, %c0_20, %c0_21, %c0_22, %c0_23] : memref<1x4x1x1x8xf32, #tpu.memory_space<vmem>>, vector<1x1x1x1x8xf32>
    %20 = vector.shape_cast %19 : vector<1x1x1x1x8xf32> to vector<1x8xf32>
    %21 = vector.broadcast %18 : vector<8x1xf32> to vector<8x8xf32>
    %22 = vector.broadcast %20 : vector<1x8xf32> to vector<8x8xf32>
    %23 = arith.subf %21, %22 : vector<8x8xf32>
    %cst_24 = arith.constant 0xFF800000 : f32
    %24 = vector.broadcast %cst_24 : f32 to vector<8x8xf32>
    %25 = arith.select %12, %23, %24 : vector<8x8xi1>, vector<8x8xf32>
    %26 = math.exp %25 : vector<8x8xf32>
    %27 = vector.broadcast %16 : vector<8x1xf32> to vector<8x16xf32>
    %28 = arith.mulf %14, %27 : vector<8x16xf32>
    %29 = arith.mulf %9, %26 : vector<8x8xf32>
    %30 = arith.truncf %29 : vector<8x8xf32> to vector<8x8xbf16>
    %31 = arith.truncf %28 : vector<8x16xf32> to vector<8x16xbf16>
    %cst_25 = arith.constant dense<0.000000e+00> : vector<8x16xf32>
    %32 = tpu.matmul %30, %31, %cst_25 {dimension_numbers = #tpu.dot_dimension_numbers<[1], [0], [0], [1], [0, 0, 1, 1], [], []>} : vector<8x8xbf16>, vector<8x16xbf16>, vector<8x16xf32> -> vector<8x16xf32>
    %c0_26 = arith.constant 0 : index
    %c0_27 = arith.constant 0 : index
    %c0_28 = arith.constant 0 : index
    %33 = vector.load %arg11[%c0_26, %c0_27, %c0_28] : memref<4x16x16xf32, #tpu.memory_space<vmem>>, vector<1x16x16xf32>
    %34 = vector.shape_cast %33 : vector<1x16x16xf32> to vector<16x16xf32>
    %35 = arith.truncf %34 : vector<16x16xf32> to vector<16x16xbf16>
    %cst_29 = arith.constant dense<0.000000e+00> : vector<8x16xf32>
    %36 = tpu.matmul %8, %35, %cst_29 {dimension_numbers = #tpu.dot_dimension_numbers<[1], [1], [0], [0], [0, 0, 1, 0], [], []>} : vector<8x16xbf16>, vector<16x16xbf16>, vector<8x16xf32> -> vector<8x16xf32>
    %37 = math.exp %18 : vector<8x1xf32>
    %38 = vector.broadcast %37 : vector<8x1xf32> to vector<8x16xf32>
    %39 = arith.mulf %38, %36 : vector<8x16xf32>
    %40 = arith.addf %32, %39 : vector<8x16xf32>
    %c0_30 = arith.constant 0 : index
    %c0_31 = arith.constant 0 : index
    %c0_32 = arith.constant 0 : index
    %41 = vector.load %arg9[%c0_30, %c0_31, %c0_32] : memref<4x1x1xf32, #tpu.memory_space<vmem>>, vector<1x1x1xf32>
    %42 = vector.shape_cast %41 : vector<1x1x1xf32> to vector<1x1xf32>
    %43 = vector.broadcast %42 : vector<1x1xf32> to vector<8x16xf32>
    %44 = arith.mulf %43, %14 : vector<8x16xf32>
    %45 = arith.addf %40, %44 : vector<8x16xf32>
    %46 = vector.extract_strided_slice %18 {offsets = [7, 0], sizes = [1, 1], strides = [1, 1]} : vector<8x1xf32> to vector<1x1xf32>
    %47 = vector.broadcast %46 : vector<1x1xf32> to vector<8x1xf32>
    %48 = arith.subf %47, %18 : vector<8x1xf32>
    %49 = math.exp %48 : vector<8x1xf32>
    %50 = vector.broadcast %49 : vector<8x1xf32> to vector<8x16xf32>
    %51 = arith.mulf %28, %50 : vector<8x16xf32>
    %52 = arith.truncf %51 : vector<8x16xf32> to vector<8x16xbf16>
    %cst_33 = arith.constant dense<0.000000e+00> : vector<16x16xf32>
    %53 = tpu.matmul %52, %6, %cst_33 {dimension_numbers = #tpu.dot_dimension_numbers<[0], [0], [1], [1], [0, 1, 1, 1], [], []>} : vector<8x16xbf16>, vector<8x16xbf16>, vector<16x16xf32> -> vector<16x16xf32>
    %54 = math.exp %46 : vector<1x1xf32>
    %55 = vector.broadcast %54 : vector<1x1xf32> to vector<16x16xf32>
    %56 = arith.mulf %55, %34 : vector<16x16xf32>
    %57 = arith.addf %56, %53 : vector<16x16xf32>
    %c0_34 = arith.constant 0 : index
    %c0_35 = arith.constant 0 : index
    %c0_36 = arith.constant 0 : index
    %58 = vector.load %arg11[%c0_34, %c0_35, %c0_36] : memref<4x16x16xf32, #tpu.memory_space<vmem>>, vector<1x16x16xf32>
    %59 = vector.shape_cast %58 : vector<1x16x16xf32> to vector<16x16xf32>
    %60 = vector.shape_cast %57 : vector<16x16xf32> to vector<1x16x16xf32>
    tpu.vector_store %arg11[%c0_34, %c0_35, %c0_36], %60 {strides = array<i32>} : memref<4x16x16xf32, #tpu.memory_space<vmem>>, vector<1x16x16xf32>,
    %61 = vector.extract_strided_slice %4 {offsets = [0, 16], sizes = [8, 16], strides = [1, 1]} : vector<8x64xbf16> to vector<8x16xbf16>
    %62 = arith.extf %61 : vector<8x16xbf16> to vector<8x16xf32>
    %c0_37 = arith.constant 0 : index
    %c1 = arith.constant 1 : index
    %c0_38 = arith.constant 0 : index
    %c0_39 = arith.constant 0 : index
    %c0_40 = arith.constant 0 : index
    %63 = vector.load %arg6[%c0_37, %c1, %c0_38, %c0_39, %c0_40] : memref<1x4x1x8x1xf32, #tpu.memory_space<vmem>>, vector<1x1x1x8x1xf32>
    %64 = vector.shape_cast %63 : vector<1x1x1x8x1xf32> to vector<8x1xf32>
    %c0_41 = arith.constant 0 : index
    %c1_42 = arith.constant 1 : index
    %c0_43 = arith.constant 0 : index
    %c0_44 = arith.constant 0 : index
    %c0_45 = arith.constant 0 : index
    %65 = vector.load %arg7[%c0_41, %c1_42, %c0_43, %c0_44, %c0_45] : memref<1x4x1x8x1xf32, #tpu.memory_space<vmem>>, vector<1x1x1x8x1xf32>
    %66 = vector.shape_cast %65 : vector<1x1x1x8x1xf32> to vector<8x1xf32>
    %c0_46 = arith.constant 0 : index
    %c1_47 = arith.constant 1 : index
    %c0_48 = arith.constant 0 : index
    %c0_49 = arith.constant 0 : index
    %c0_50 = arith.constant 0 : index
    %67 = vector.load %arg8[%c0_46, %c1_47, %c0_48, %c0_49, %c0_50] : memref<1x4x1x1x8xf32, #tpu.memory_space<vmem>>, vector<1x1x1x1x8xf32>
    %68 = vector.shape_cast %67 : vector<1x1x1x1x8xf32> to vector<1x8xf32>
    %69 = vector.broadcast %66 : vector<8x1xf32> to vector<8x8xf32>
    %70 = vector.broadcast %68 : vector<1x8xf32> to vector<8x8xf32>
    %71 = arith.subf %69, %70 : vector<8x8xf32>
    %cst_51 = arith.constant 0xFF800000 : f32
    %72 = vector.broadcast %cst_51 : f32 to vector<8x8xf32>
    %73 = arith.select %12, %71, %72 : vector<8x8xi1>, vector<8x8xf32>
    %74 = math.exp %73 : vector<8x8xf32>
    %75 = vector.broadcast %64 : vector<8x1xf32> to vector<8x16xf32>
    %76 = arith.mulf %62, %75 : vector<8x16xf32>
    %77 = arith.mulf %9, %74 : vector<8x8xf32>
    %78 = arith.truncf %77 : vector<8x8xf32> to vector<8x8xbf16>
    %79 = arith.truncf %76 : vector<8x16xf32> to vector<8x16xbf16>
    %cst_52 = arith.constant dense<0.000000e+00> : vector<8x16xf32>
    %80 = tpu.matmul %78, %79, %cst_52 {dimension_numbers = #tpu.dot_dimension_numbers<[1], [0], [0], [1], [0, 0, 1, 1], [], []>} : vector<8x8xbf16>, vector<8x16xbf16>, vector<8x16xf32> -> vector<8x16xf32>
    %c1_53 = arith.constant 1 : index
    %c0_54 = arith.constant 0 : index
    %c0_55 = arith.constant 0 : index
    %81 = vector.load %arg11[%c1_53, %c0_54, %c0_55] : memref<4x16x16xf32, #tpu.memory_space<vmem>>, vector<1x16x16xf32>
    %82 = vector.shape_cast %81 : vector<1x16x16xf32> to vector<16x16xf32>
    %83 = arith.truncf %82 : vector<16x16xf32> to vector<16x16xbf16>
    %cst_56 = arith.constant dense<0.000000e+00> : vector<8x16xf32>
    %84 = tpu.matmul %8, %83, %cst_56 {dimension_numbers = #tpu.dot_dimension_numbers<[1], [1], [0], [0], [0, 0, 1, 0], [], []>} : vector<8x16xbf16>, vector<16x16xbf16>, vector<8x16xf32> -> vector<8x16xf32>
    %85 = math.exp %66 : vector<8x1xf32>
    %86 = vector.broadcast %85 : vector<8x1xf32> to vector<8x16xf32>
    %87 = arith.mulf %86, %84 : vector<8x16xf32>
    %88 = arith.addf %80, %87 : vector<8x16xf32>
    %c1_57 = arith.constant 1 : index
    %c0_58 = arith.constant 0 : index
    %c0_59 = arith.constant 0 : index
    %89 = vector.load %arg9[%c1_57, %c0_58, %c0_59] : memref<4x1x1xf32, #tpu.memory_space<vmem>>, vector<1x1x1xf32>
    %90 = vector.shape_cast %89 : vector<1x1x1xf32> to vector<1x1xf32>
    %91 = vector.broadcast %90 : vector<1x1xf32> to vector<8x16xf32>
    %92 = arith.mulf %91, %62 : vector<8x16xf32>
    %93 = arith.addf %88, %92 : vector<8x16xf32>
    %94 = vector.extract_strided_slice %66 {offsets = [7, 0], sizes = [1, 1], strides = [1, 1]} : vector<8x1xf32> to vector<1x1xf32>
    %95 = vector.broadcast %94 : vector<1x1xf32> to vector<8x1xf32>
    %96 = arith.subf %95, %66 : vector<8x1xf32>
    %97 = math.exp %96 : vector<8x1xf32>
    %98 = vector.broadcast %97 : vector<8x1xf32> to vector<8x16xf32>
    %99 = arith.mulf %76, %98 : vector<8x16xf32>
    %100 = arith.truncf %99 : vector<8x16xf32> to vector<8x16xbf16>
    %cst_60 = arith.constant dense<0.000000e+00> : vector<16x16xf32>
    %101 = tpu.matmul %100, %6, %cst_60 {dimension_numbers = #tpu.dot_dimension_numbers<[0], [0], [1], [1], [0, 1, 1, 1], [], []>} : vector<8x16xbf16>, vector<8x16xbf16>, vector<16x16xf32> -> vector<16x16xf32>
    %102 = math.exp %94 : vector<1x1xf32>
    %103 = vector.broadcast %102 : vector<1x1xf32> to vector<16x16xf32>
    %104 = arith.mulf %103, %82 : vector<16x16xf32>
    %105 = arith.addf %104, %101 : vector<16x16xf32>
    %c1_61 = arith.constant 1 : index
    %c0_62 = arith.constant 0 : index
    %c0_63 = arith.constant 0 : index
    %106 = vector.load %arg11[%c1_61, %c0_62, %c0_63] : memref<4x16x16xf32, #tpu.memory_space<vmem>>, vector<1x16x16xf32>
    %107 = vector.shape_cast %106 : vector<1x16x16xf32> to vector<16x16xf32>
    %108 = vector.shape_cast %105 : vector<16x16xf32> to vector<1x16x16xf32>
    tpu.vector_store %arg11[%c1_61, %c0_62, %c0_63], %108 {strides = array<i32>} : memref<4x16x16xf32, #tpu.memory_space<vmem>>, vector<1x16x16xf32>,
    %109 = vector.extract_strided_slice %4 {offsets = [0, 32], sizes = [8, 16], strides = [1, 1]} : vector<8x64xbf16> to vector<8x16xbf16>
    %110 = arith.extf %109 : vector<8x16xbf16> to vector<8x16xf32>
    %c0_64 = arith.constant 0 : index
    %c2 = arith.constant 2 : index
    %c0_65 = arith.constant 0 : index
    %c0_66 = arith.constant 0 : index
    %c0_67 = arith.constant 0 : index
    %111 = vector.load %arg6[%c0_64, %c2, %c0_65, %c0_66, %c0_67] : memref<1x4x1x8x1xf32, #tpu.memory_space<vmem>>, vector<1x1x1x8x1xf32>
    %112 = vector.shape_cast %111 : vector<1x1x1x8x1xf32> to vector<8x1xf32>
    %c0_68 = arith.constant 0 : index
    %c2_69 = arith.constant 2 : index
    %c0_70 = arith.constant 0 : index
    %c0_71 = arith.constant 0 : index
    %c0_72 = arith.constant 0 : index
    %113 = vector.load %arg7[%c0_68, %c2_69, %c0_70, %c0_71, %c0_72] : memref<1x4x1x8x1xf32, #tpu.memory_space<vmem>>, vector<1x1x1x8x1xf32>
    %114 = vector.shape_cast %113 : vector<1x1x1x8x1xf32> to vector<8x1xf32>
    %c0_73 = arith.constant 0 : index
    %c2_74 = arith.constant 2 : index
    %c0_75 = arith.constant 0 : index
    %c0_76 = arith.constant 0 : index
    %c0_77 = arith.constant 0 : index
    %115 = vector.load %arg8[%c0_73, %c2_74, %c0_75, %c0_76, %c0_77] : memref<1x4x1x1x8xf32, #tpu.memory_space<vmem>>, vector<1x1x1x1x8xf32>
    %116 = vector.shape_cast %115 : vector<1x1x1x1x8xf32> to vector<1x8xf32>
    %117 = vector.broadcast %114 : vector<8x1xf32> to vector<8x8xf32>
    %118 = vector.broadcast %116 : vector<1x8xf32> to vector<8x8xf32>
    %119 = arith.subf %117, %118 : vector<8x8xf32>
    %cst_78 = arith.constant 0xFF800000 : f32
    %120 = vector.broadcast %cst_78 : f32 to vector<8x8xf32>
    %121 = arith.select %12, %119, %120 : vector<8x8xi1>, vector<8x8xf32>
    %122 = math.exp %121 : vector<8x8xf32>
    %123 = vector.broadcast %112 : vector<8x1xf32> to vector<8x16xf32>
    %124 = arith.mulf %110, %123 : vector<8x16xf32>
    %125 = arith.mulf %9, %122 : vector<8x8xf32>
    %126 = arith.truncf %125 : vector<8x8xf32> to vector<8x8xbf16>
    %127 = arith.truncf %124 : vector<8x16xf32> to vector<8x16xbf16>
    %cst_79 = arith.constant dense<0.000000e+00> : vector<8x16xf32>
    %128 = tpu.matmul %126, %127, %cst_79 {dimension_numbers = #tpu.dot_dimension_numbers<[1], [0], [0], [1], [0, 0, 1, 1], [], []>} : vector<8x8xbf16>, vector<8x16xbf16>, vector<8x16xf32> -> vector<8x16xf32>
    %c2_80 = arith.constant 2 : index
    %c0_81 = arith.constant 0 : index
    %c0_82 = arith.constant 0 : index
    %129 = vector.load %arg11[%c2_80, %c0_81, %c0_82] : memref<4x16x16xf32, #tpu.memory_space<vmem>>, vector<1x16x16xf32>
    %130 = vector.shape_cast %129 : vector<1x16x16xf32> to vector<16x16xf32>
    %131 = arith.truncf %130 : vector<16x16xf32> to vector<16x16xbf16>
    %cst_83 = arith.constant dense<0.000000e+00> : vector<8x16xf32>
    %132 = tpu.matmul %8, %131, %cst_83 {dimension_numbers = #tpu.dot_dimension_numbers<[1], [1], [0], [0], [0, 0, 1, 0], [], []>} : vector<8x16xbf16>, vector<16x16xbf16>, vector<8x16xf32> -> vector<8x16xf32>
    %133 = math.exp %114 : vector<8x1xf32>
    %134 = vector.broadcast %133 : vector<8x1xf32> to vector<8x16xf32>
    %135 = arith.mulf %134, %132 : vector<8x16xf32>
    %136 = arith.addf %128, %135 : vector<8x16xf32>
    %c2_84 = arith.constant 2 : index
    %c0_85 = arith.constant 0 : index
    %c0_86 = arith.constant 0 : index
    %137 = vector.load %arg9[%c2_84, %c0_85, %c0_86] : memref<4x1x1xf32, #tpu.memory_space<vmem>>, vector<1x1x1xf32>
    %138 = vector.shape_cast %137 : vector<1x1x1xf32> to vector<1x1xf32>
    %139 = vector.broadcast %138 : vector<1x1xf32> to vector<8x16xf32>
    %140 = arith.mulf %139, %110 : vector<8x16xf32>
    %141 = arith.addf %136, %140 : vector<8x16xf32>
    %142 = vector.extract_strided_slice %114 {offsets = [7, 0], sizes = [1, 1], strides = [1, 1]} : vector<8x1xf32> to vector<1x1xf32>
    %143 = vector.broadcast %142 : vector<1x1xf32> to vector<8x1xf32>
    %144 = arith.subf %143, %114 : vector<8x1xf32>
    %145 = math.exp %144 : vector<8x1xf32>
    %146 = vector.broadcast %145 : vector<8x1xf32> to vector<8x16xf32>
    %147 = arith.mulf %124, %146 : vector<8x16xf32>
    %148 = arith.truncf %147 : vector<8x16xf32> to vector<8x16xbf16>
    %cst_87 = arith.constant dense<0.000000e+00> : vector<16x16xf32>
    %149 = tpu.matmul %148, %6, %cst_87 {dimension_numbers = #tpu.dot_dimension_numbers<[0], [0], [1], [1], [0, 1, 1, 1], [], []>} : vector<8x16xbf16>, vector<8x16xbf16>, vector<16x16xf32> -> vector<16x16xf32>
    %150 = math.exp %142 : vector<1x1xf32>
    %151 = vector.broadcast %150 : vector<1x1xf32> to vector<16x16xf32>
    %152 = arith.mulf %151, %130 : vector<16x16xf32>
    %153 = arith.addf %152, %149 : vector<16x16xf32>
    %c2_88 = arith.constant 2 : index
    %c0_89 = arith.constant 0 : index
    %c0_90 = arith.constant 0 : index
    %154 = vector.load %arg11[%c2_88, %c0_89, %c0_90] : memref<4x16x16xf32, #tpu.memory_space<vmem>>, vector<1x16x16xf32>
    %155 = vector.shape_cast %154 : vector<1x16x16xf32> to vector<16x16xf32>
    %156 = vector.shape_cast %153 : vector<16x16xf32> to vector<1x16x16xf32>
    tpu.vector_store %arg11[%c2_88, %c0_89, %c0_90], %156 {strides = array<i32>} : memref<4x16x16xf32, #tpu.memory_space<vmem>>, vector<1x16x16xf32>,
    %157 = vector.extract_strided_slice %4 {offsets = [0, 48], sizes = [8, 16], strides = [1, 1]} : vector<8x64xbf16> to vector<8x16xbf16>
    %158 = arith.extf %157 : vector<8x16xbf16> to vector<8x16xf32>
    %c0_91 = arith.constant 0 : index
    %c3 = arith.constant 3 : index
    %c0_92 = arith.constant 0 : index
    %c0_93 = arith.constant 0 : index
    %c0_94 = arith.constant 0 : index
    %159 = vector.load %arg6[%c0_91, %c3, %c0_92, %c0_93, %c0_94] : memref<1x4x1x8x1xf32, #tpu.memory_space<vmem>>, vector<1x1x1x8x1xf32>
    %160 = vector.shape_cast %159 : vector<1x1x1x8x1xf32> to vector<8x1xf32>
    %c0_95 = arith.constant 0 : index
    %c3_96 = arith.constant 3 : index
    %c0_97 = arith.constant 0 : index
    %c0_98 = arith.constant 0 : index
    %c0_99 = arith.constant 0 : index
    %161 = vector.load %arg7[%c0_95, %c3_96, %c0_97, %c0_98, %c0_99] : memref<1x4x1x8x1xf32, #tpu.memory_space<vmem>>, vector<1x1x1x8x1xf32>
    %162 = vector.shape_cast %161 : vector<1x1x1x8x1xf32> to vector<8x1xf32>
    %c0_100 = arith.constant 0 : index
    %c3_101 = arith.constant 3 : index
    %c0_102 = arith.constant 0 : index
    %c0_103 = arith.constant 0 : index
    %c0_104 = arith.constant 0 : index
    %163 = vector.load %arg8[%c0_100, %c3_101, %c0_102, %c0_103, %c0_104] : memref<1x4x1x1x8xf32, #tpu.memory_space<vmem>>, vector<1x1x1x1x8xf32>
    %164 = vector.shape_cast %163 : vector<1x1x1x1x8xf32> to vector<1x8xf32>
    %165 = vector.broadcast %162 : vector<8x1xf32> to vector<8x8xf32>
    %166 = vector.broadcast %164 : vector<1x8xf32> to vector<8x8xf32>
    %167 = arith.subf %165, %166 : vector<8x8xf32>
    %cst_105 = arith.constant 0xFF800000 : f32
    %168 = vector.broadcast %cst_105 : f32 to vector<8x8xf32>
    %169 = arith.select %12, %167, %168 : vector<8x8xi1>, vector<8x8xf32>
    %170 = math.exp %169 : vector<8x8xf32>
    %171 = vector.broadcast %160 : vector<8x1xf32> to vector<8x16xf32>
    %172 = arith.mulf %158, %171 : vector<8x16xf32>
    %173 = arith.mulf %9, %170 : vector<8x8xf32>
    %174 = arith.truncf %173 : vector<8x8xf32> to vector<8x8xbf16>
    %175 = arith.truncf %172 : vector<8x16xf32> to vector<8x16xbf16>
    %cst_106 = arith.constant dense<0.000000e+00> : vector<8x16xf32>
    %176 = tpu.matmul %174, %175, %cst_106 {dimension_numbers = #tpu.dot_dimension_numbers<[1], [0], [0], [1], [0, 0, 1, 1], [], []>} : vector<8x8xbf16>, vector<8x16xbf16>, vector<8x16xf32> -> vector<8x16xf32>
    %c3_107 = arith.constant 3 : index
    %c0_108 = arith.constant 0 : index
    %c0_109 = arith.constant 0 : index
    %177 = vector.load %arg11[%c3_107, %c0_108, %c0_109] : memref<4x16x16xf32, #tpu.memory_space<vmem>>, vector<1x16x16xf32>
    %178 = vector.shape_cast %177 : vector<1x16x16xf32> to vector<16x16xf32>
    %179 = arith.truncf %178 : vector<16x16xf32> to vector<16x16xbf16>
    %cst_110 = arith.constant dense<0.000000e+00> : vector<8x16xf32>
    %180 = tpu.matmul %8, %179, %cst_110 {dimension_numbers = #tpu.dot_dimension_numbers<[1], [1], [0], [0], [0, 0, 1, 0], [], []>} : vector<8x16xbf16>, vector<16x16xbf16>, vector<8x16xf32> -> vector<8x16xf32>
    %181 = math.exp %162 : vector<8x1xf32>
    %182 = vector.broadcast %181 : vector<8x1xf32> to vector<8x16xf32>
    %183 = arith.mulf %182, %180 : vector<8x16xf32>
    %184 = arith.addf %176, %183 : vector<8x16xf32>
    %c3_111 = arith.constant 3 : index
    %c0_112 = arith.constant 0 : index
    %c0_113 = arith.constant 0 : index
    %185 = vector.load %arg9[%c3_111, %c0_112, %c0_113] : memref<4x1x1xf32, #tpu.memory_space<vmem>>, vector<1x1x1xf32>
    %186 = vector.shape_cast %185 : vector<1x1x1xf32> to vector<1x1xf32>
    %187 = vector.broadcast %186 : vector<1x1xf32> to vector<8x16xf32>
    %188 = arith.mulf %187, %158 : vector<8x16xf32>
    %189 = arith.addf %184, %188 : vector<8x16xf32>
    %190 = vector.extract_strided_slice %162 {offsets = [7, 0], sizes = [1, 1], strides = [1, 1]} : vector<8x1xf32> to vector<1x1xf32>
    %191 = vector.broadcast %190 : vector<1x1xf32> to vector<8x1xf32>
    %192 = arith.subf %191, %162 : vector<8x1xf32>
    %193 = math.exp %192 : vector<8x1xf32>
    %194 = vector.broadcast %193 : vector<8x1xf32> to vector<8x16xf32>
    %195 = arith.mulf %172, %194 : vector<8x16xf32>
    %196 = arith.truncf %195 : vector<8x16xf32> to vector<8x16xbf16>
    %cst_114 = arith.constant dense<0.000000e+00> : vector<16x16xf32>
    %197 = tpu.matmul %196, %6, %cst_114 {dimension_numbers = #tpu.dot_dimension_numbers<[0], [0], [1], [1], [0, 1, 1, 1], [], []>} : vector<8x16xbf16>, vector<8x16xbf16>, vector<16x16xf32> -> vector<16x16xf32>
    %198 = math.exp %190 : vector<1x1xf32>
    %199 = vector.broadcast %198 : vector<1x1xf32> to vector<16x16xf32>
    %200 = arith.mulf %199, %178 : vector<16x16xf32>
    %201 = arith.addf %200, %197 : vector<16x16xf32>
    %c3_115 = arith.constant 3 : index
    %c0_116 = arith.constant 0 : index
    %c0_117 = arith.constant 0 : index
    %202 = vector.load %arg11[%c3_115, %c0_116, %c0_117] : memref<4x16x16xf32, #tpu.memory_space<vmem>>, vector<1x16x16xf32>
    %203 = vector.shape_cast %202 : vector<1x16x16xf32> to vector<16x16xf32>
    %204 = vector.shape_cast %201 : vector<16x16xf32> to vector<1x16x16xf32>
    tpu.vector_store %arg11[%c3_115, %c0_116, %c0_117], %204 {strides = array<i32>} : memref<4x16x16xf32, #tpu.memory_space<vmem>>, vector<1x16x16xf32>,
    %205 = tpu.concatenate %45, %93, %141, %189 in 1 : vector<8x16xf32>, vector<8x16xf32>, vector<8x16xf32>, vector<8x16xf32> -> vector<8x64xf32>
    %206 = arith.truncf %205 : vector<8x64xf32> to vector<8x64xbf16>
    %c0_118 = arith.constant 0 : index
    %c0_119 = arith.constant 0 : index
    %c0_120 = arith.constant 0 : index
    %207 = vector.load %arg10[%c0_118, %c0_119, %c0_120] : memref<1x8x64xbf16, #tpu.memory_space<vmem>>, vector<1x8x64xbf16>
    %208 = vector.shape_cast %207 : vector<1x8x64xbf16> to vector<8x64xbf16>
    %209 = vector.shape_cast %206 : vector<8x64xbf16> to vector<1x8x64xbf16>
    tpu.vector_store %arg10[%c0_118, %c0_119, %c0_120], %209 {strides = array<i32>} : memref<1x8x64xbf16, #tpu.memory_space<vmem>>, vector<1x8x64xbf16>,
    return
  }
  func.func @transform_0(%arg0: i32, %arg1: i32, %arg2: i32) -> (i32, i32, i32) {
    %c0_i32 = arith.constant 0 : i32
    return %arg0, %arg2, %arg1 : i32, i32, i32
  }
  func.func @transform_1(%arg0: i32, %arg1: i32, %arg2: i32) -> (i32, i32, i32) {
    %c0_i32 = arith.constant 0 : i32
    %c0_i32_0 = arith.constant 0 : i32
    return %arg0, %arg2, %c0_i32 : i32, i32, i32
  }
  func.func @transform_2(%arg0: i32, %arg1: i32, %arg2: i32) -> (i32, i32, i32) {
    %c0_i32 = arith.constant 0 : i32
    %c0_i32_0 = arith.constant 0 : i32
    return %arg0, %arg2, %c0_i32 : i32, i32, i32
  }
  func.func @transform_3(%arg0: i32, %arg1: i32, %arg2: i32) -> (i32, i32, i32, i32, i32) {
    %c0_i32 = arith.constant 0 : i32
    %c0_i32_0 = arith.constant 0 : i32
    %c0_i32_1 = arith.constant 0 : i32
    return %arg0, %arg1, %arg2, %c0_i32, %c0_i32_0 : i32, i32, i32, i32, i32
  }
  func.func @transform_4(%arg0: i32, %arg1: i32, %arg2: i32) -> (i32, i32, i32, i32, i32) {
    %c0_i32 = arith.constant 0 : i32
    %c0_i32_0 = arith.constant 0 : i32
    %c0_i32_1 = arith.constant 0 : i32
    return %arg0, %arg1, %arg2, %c0_i32, %c0_i32_0 : i32, i32, i32, i32, i32
  }
  func.func @transform_5(%arg0: i32, %arg1: i32, %arg2: i32) -> (i32, i32, i32, i32, i32) {
    %c0_i32 = arith.constant 0 : i32
    %c0_i32_0 = arith.constant 0 : i32
    %c0_i32_1 = arith.constant 0 : i32
    return %arg0, %arg1, %arg2, %c0_i32, %c0_i32_0 : i32, i32, i32, i32, i32
  }
  func.func @transform_6(%arg0: i32, %arg1: i32, %arg2: i32) -> (i32, i32, i32) {
    %c0_i32 = arith.constant 0 : i32
    %c0_i32_0 = arith.constant 0 : i32
    %c0_i32_1 = arith.constant 0 : i32
    return %arg1, %c0_i32, %c0_i32_0 : i32, i32, i32
  }
  func.func @transform_7(%arg0: i32, %arg1: i32, %arg2: i32) -> (i32, i32, i32) {
    %c0_i32 = arith.constant 0 : i32
    return %arg0, %arg2, %arg1 : i32, i32, i32
  }
}

module attributes {stable_mosaic.version = 11 : i64} {
  func.func @_rmsnorm_outproj_kernel(%arg0: i32, %arg1: i32, %arg2: memref<32x64xbf16, #tpu.memory_space<vmem>>, %arg3: memref<32x64xbf16, #tpu.memory_space<vmem>>, %arg4: memref<1x64xf32, #tpu.memory_space<vmem>>, %arg5: memref<64x128xbf16, #tpu.memory_space<vmem>>, %arg6: memref<32x128xf32, #tpu.memory_space<vmem>>, %arg7: memref<32x64xbf16, #tpu.memory_space<vmem>>) attributes {dimension_semantics = [#tpu.dimension_semantics<parallel>, #tpu.dimension_semantics<arbitrary>], iteration_bounds = array<i64: 1, 1>, scalar_prefetch = 0 : i64, scratch_operands = 1 : i64, tpu.core_type = #tpu.core_type<tc>, window_params = [{transform_indices = @transform_0, window_bounds = array<i64: 32, 64>}, {transform_indices = @transform_1, window_bounds = array<i64: 32, 64>}, {pipeline_mode = #tpu.pipeline_mode<synchronous>, transform_indices = @transform_2, window_bounds = array<i64: 1, 64>}, {transform_indices = @transform_3, window_bounds = array<i64: 64, 128>}, {transform_indices = @transform_4, window_bounds = array<i64: 32, 128>}]} {
    %c0_i32 = arith.constant 0 : i32
    %0 = arith.cmpi eq, %arg1, %c0_i32 : i32
    %1 = arith.extui %0 : i1 to i32
    %c0_i32_0 = arith.constant 0 : i32
    %2 = arith.cmpi ne, %1, %c0_i32_0 : i32
    scf.if %2 {
      %c0_6 = arith.constant 0 : index
      %c0_7 = arith.constant 0 : index
      %7 = vector.load %arg2[%c0_6, %c0_7] : memref<32x64xbf16, #tpu.memory_space<vmem>>, vector<32x64xbf16>
      %8 = arith.extf %7 : vector<32x64xbf16> to vector<32x64xf32>
      %c0_8 = arith.constant 0 : index
      %c0_9 = arith.constant 0 : index
      %9 = vector.load %arg3[%c0_8, %c0_9] : memref<32x64xbf16, #tpu.memory_space<vmem>>, vector<32x64xbf16>
      %10 = arith.extf %9 : vector<32x64xbf16> to vector<32x64xf32>
      %11 = arith.negf %10 : vector<32x64xf32>
      %12 = math.exp %11 : vector<32x64xf32>
      %cst_10 = arith.constant 1.000000e+00 : f32
      %13 = vector.broadcast %cst_10 : f32 to vector<32x64xf32>
      %14 = arith.addf %13, %12 : vector<32x64xf32>
      %15 = arith.divf %13, %14 : vector<32x64xf32>
      %16 = arith.mulf %10, %15 : vector<32x64xf32>
      %17 = arith.mulf %8, %16 : vector<32x64xf32>
      %18 = arith.mulf %17, %17 : vector<32x64xf32>
      %cst_11 = arith.constant dense<0.000000e+00> : vector<32xf32>
      %19 = vector.multi_reduction <add>, %18, %cst_11 [1] : vector<32x64xf32> to vector<32xf32>
      %20 = vector.shape_cast %19 : vector<32xf32> to vector<32x1xf32>
      %cst_12 = arith.constant 6.400000e+01 : f32
      %21 = vector.broadcast %cst_12 : f32 to vector<32x1xf32>
      %22 = arith.divf %20, %21 : vector<32x1xf32>
      %cst_13 = arith.constant 9.99999974E-6 : f32
      %23 = vector.broadcast %cst_13 : f32 to vector<32x1xf32>
      %24 = arith.addf %22, %23 : vector<32x1xf32>
      %25 = math.rsqrt %24 : vector<32x1xf32>
      %26 = vector.broadcast %25 : vector<32x1xf32> to vector<32x64xf32>
      %27 = arith.mulf %17, %26 : vector<32x64xf32>
      %c0_14 = arith.constant 0 : index
      %c0_15 = arith.constant 0 : index
      %28 = vector.load %arg4[%c0_14, %c0_15] : memref<1x64xf32, #tpu.memory_space<vmem>>, vector<1x64xf32>
      %29 = vector.broadcast %28 : vector<1x64xf32> to vector<32x64xf32>
      %30 = arith.mulf %27, %29 : vector<32x64xf32>
      %31 = arith.truncf %30 : vector<32x64xf32> to vector<32x64xbf16>
      %c0_16 = arith.constant 0 : index
      %c0_17 = arith.constant 0 : index
      %32 = vector.load %arg7[%c0_16, %c0_17] : memref<32x64xbf16, #tpu.memory_space<vmem>>, vector<32x64xbf16>
      tpu.vector_store %arg7[%c0_16, %c0_17], %31 {strides = array<i32>} : memref<32x64xbf16, #tpu.memory_space<vmem>>, vector<32x64xbf16>,
    } else {
    }
    %c0 = arith.constant 0 : index
    %c0_1 = arith.constant 0 : index
    %3 = vector.load %arg7[%c0, %c0_1] : memref<32x64xbf16, #tpu.memory_space<vmem>>, vector<32x64xbf16>
    %c0_2 = arith.constant 0 : index
    %c0_3 = arith.constant 0 : index
    %4 = vector.load %arg5[%c0_2, %c0_3] : memref<64x128xbf16, #tpu.memory_space<vmem>>, vector<64x128xbf16>
    %cst = arith.constant dense<0.000000e+00> : vector<32x128xf32>
    %5 = tpu.matmul %3, %4, %cst {dimension_numbers = #tpu.dot_dimension_numbers<[1], [0], [0], [1], [0, 0, 1, 1], [], []>} : vector<32x64xbf16>, vector<64x128xbf16>, vector<32x128xf32> -> vector<32x128xf32>
    %c0_4 = arith.constant 0 : index
    %c0_5 = arith.constant 0 : index
    %6 = vector.load %arg6[%c0_4, %c0_5] : memref<32x128xf32, #tpu.memory_space<vmem>>, vector<32x128xf32>
    tpu.vector_store %arg6[%c0_4, %c0_5], %5 {strides = array<i32>} : memref<32x128xf32, #tpu.memory_space<vmem>>, vector<32x128xf32>,
    return
  }
  func.func @transform_0(%arg0: i32, %arg1: i32) -> (i32, i32) {
    %c0_i32 = arith.constant 0 : i32
    %c0_i32_0 = arith.constant 0 : i32
    return %arg0, %c0_i32 : i32, i32
  }
  func.func @transform_1(%arg0: i32, %arg1: i32) -> (i32, i32) {
    %c0_i32 = arith.constant 0 : i32
    %c0_i32_0 = arith.constant 0 : i32
    return %arg0, %c0_i32 : i32, i32
  }
  func.func @transform_2(%arg0: i32, %arg1: i32) -> (i32, i32) {
    %c0_i32 = arith.constant 0 : i32
    %c0_i32_0 = arith.constant 0 : i32
    %c0_i32_1 = arith.constant 0 : i32
    return %c0_i32, %c0_i32_0 : i32, i32
  }
  func.func @transform_3(%arg0: i32, %arg1: i32) -> (i32, i32) {
    %c0_i32 = arith.constant 0 : i32
    %c0_i32_0 = arith.constant 0 : i32
    return %c0_i32, %arg1 : i32, i32
  }
  func.func @transform_4(%arg0: i32, %arg1: i32) -> (i32, i32) {
    %c0_i32 = arith.constant 0 : i32
    return %arg0, %arg1 : i32, i32
  }
}

</mosaic_0001>

<bundles_post_ra>
// kernel: _lambda_.5
= control target key start
LH: loop header
LB: loop body
LE: loop exit
PB: predicated region body
PF: predicated region fallthrough
CT: control target
= control target key end

     0   :  { %s580_s12 = smov 0   ;;  %s582_s13 = smov 0   ;;  %s640_s0 = inlined_call_operand.vmem [shape: bf16[2,16,96], index: 0, kind: input, shape index: {}]   ;;  %s641_s1 = inlined_call_operand.vmem [shape: f32[4,96], index: 1, kind: input, shape index: {}]   ;;  %s642_s2 = inlined_call_operand.vmem [shape: f32[1,96], index: 2, kind: input, shape index: {}]   ;;  %s643_s3 = inlined_call_operand.vmem [shape: bf16[2,16,96], index: 3, kind: output, shape index: {}]  }
   0x1   :  { %s584_s14 = smov 0   ;;  %s586_s15 = smov 0  }
   0x2   :  { %s588_s16 = smov 0  }
   0x3 LB: > { %s25_s17 = sadd.s32 1, %s549_s14  ;;  %s32_s18 = sadd.s32 1, %s553_s15  ;;  %s557_s16 = sphi %s588_s16, %s13_s16   ;;  %s553_s15 = sphi %s586_s15, %s647_s15   ;;  %s549_s14 = sphi %s584_s14, %s646_s14   ;;  %s545_s13 = sphi %s582_s13, %s645_s13   ;;  %s541_s12 = sphi %s580_s12, %s644_s12  }
   0x4   : > { %p26_p0 = scmp.ge.s32.totalorder %s25_s17, 2  ;;  %p464_p1 = scmp.ge.s32.totalorder %s557_s16, 1 }
   0x5   : > { %p187_p2 = scmp.lt.s32.totalorder %s557_s16, 5 }
   0x6   : > { %s649_s17 = smov (%p26_p0, %s25_s17), 0  ;;  %s651_s18 = smov (!%p26_p0, %s32_s18), %s553_s15 }
   0x7   : > { %p188_p3 = pnand %p464_p1, %p187_p2  ;;  %p34_p4 = scmp.ge.s32.totalorder %s651_s18, 2 }
   0x8   : > { %p230_p5 = scmp.lt.s32.totalorder (!%p188_p3), %s545_s13, 1  ;;  %p232_p6 = scmp.lt.s32.totalorder (!%p188_p3), %s541_s12, 1 }
   0x9   : > { %s653_s18 = smov (%p34_p4, %s651_s18), 0  ;;  %191 = sbr.rel (%p188_p3) target bundleno = 74 (0x4a), region = 32 }
   0xa   : > { %p469_p7 = scmp.ne.s32.totalorder (!%p188_p3), %s541_s12, 0 }
   0xe   : > { %s655_s13 = smov (!%p230_p5, %s545_s13), 1 }
   0xf   : > { %s233_s19 = scalar_select %p232_p6, %s541_s12, 1 }
  0x10   : > { %s465_s20 = sshll.u32 %s655_s13, 1  ;;  %262 = sbr.rel (%p469_p7) target bundleno = 23 (0x17), region = 36 }
  0x11   : > { %s238_s21 = sadd.s32 %s465_s20, %s233_s19 }
  0x12   : > { %s466_s22 = sshll.u32 %s238_s21, 2 }
  0x13   : > { %s240_s25 = scalar_lea.vmem %s640_s0, %s466_s22  ;;  %s616_s28 = scalar_lea.vmem %s643_s3, %s466_s22 }
  0x15   : > { %vm263_vm0 = vcmask 780288   ;;  %v559_v0 = vmov 0.0  }
  0x16   : > { %264 = vst.msk [vmem:[#allocation2] sm:$0x7] %vm263_vm0, %v559_v0 }
  0x17 PF: > { %v265_v1 = vld [vmem:[%s240_s25] sm:$0xf]  ;;  %vm274_vm1 = vcmask 1042432   ;;  %vm284_vm2 = vcmask 1041408   ;;  %vm293_vm3 = vcmask 1040384   ;;  %vm326_vm4 = vcmask 785413  }
  0x18   : > { %v268_v3 = vld [vmem:[%s641_s1] sm:$0xf]  ;;  %v266_v4 = vunpack.c.l.bf16 %v265_v1  ;;  %vm324_vm9 = vcmask 781312  }
  0x19   : > { %v269_v5 = vperm.slane %v268_v3, 3  ;;  %v276_v6 = vperm.slane %v268_v3, 0  ;;  %v286_v8 = vperm.slane %v268_v3, 1  ;;  %v295_v14 = vperm.slane %v268_v3, 2  ;;  %v514_v23 = vld [vmem:[%s642_s2] ss:$0 sm:$0xff] }
  0x1a   : > { %v272_v10 = vrot.slane %v266_v4, 5  ;;  %v282_v11 = vrot.slane %v266_v4, 6  ;;  %v291_v12 = vrot.slane %v266_v4, 7 }
  0x1b   : > { %v270_v13 = vmul.f32 %v269_v5, %v266_v4 }
  0x1d   : > { %v267_v2 = vld [vmem:[#allocation2] sm:$0x7] }
  0x1e   : > { %v280_v7 = vrot.slane %v267_v2, 1  ;;  %v289_v9 = vrot.slane %v267_v2, 2  ;;  %v275_v15 = vsel %vm274_vm1, %v267_v2, %v272_v10  ;;  %327 = vst.msk [vmem:[#allocation2 - $0x5] sm:$0xe0] %vm326_vm4, %v266_v4 }
  0x1f   : > { %v277_v18 = vmul.f32 %v276_v6, %v275_v15 }
  0x20   : > { %v285_v16 = vsel %vm284_vm2, %v280_v7, %v282_v11  ;;  %v294_v17 = vsel %vm293_vm3, %v289_v9, %v291_v12 }
  0x21   : > { %v287_v19 = vmul.f32 %v286_v8, %v285_v16  ;;  %v278_v20 = vadd.f32 %v277_v18, %v270_v13  ;;  %v296_v21 = vmul.f32 %v295_v14, %v294_v17 }
  0x23   : > { %v288_v22 = vadd.f32 %v287_v19, %v278_v20 }
  0x25   : > { %v297_v24 = vadd.f32 %v296_v21, %v288_v22 }
  0x27   : > { %v302_v25 = vadd.f32 %v514_v23, %v297_v24 }
  0x29   : > { %v470_v26 = vmul.f32 -1.442695, %v302_v25 }
  0x2b   : > { %515 = vpow2.f32 %v470_v26 }
  0x31   : > { %v516_v27 = vpop.eup %515 }
  0x32   : > { %v306_v28 = vadd.f32 1.0, %v516_v27 }
  0x34   : > { %517 = vrcp.f32 %v306_v28  ;;  %v318_v31 = vand.u32 2147483648, %v306_v28  ;;  %vm312_vm5 = vweird.f32 %v306_v28  ;;  %v316_v33 = vand.u32 2147483647, %v306_v28 }
  0x36   : > { %v319_v35 = vor.u32 1.1754944e-38, %v318_v31  ;;  %vm317_vm8 = vcmp.eq.f32.partialorder %v316_v33, 8.507059e+37 }
  0x3a   : > { %v518_v29 = vpop.eup %517 }
  0x3b   : > { %v308_v30 = vmul.f32 %v518_v29, %v306_v28  ;;  %vm313_vm6 = vweird.f32 %v518_v29 }
  0x3c   : > { %vm314_vm7 = vmor %vm312_vm5, %vm313_vm6 }
  0x3d   : > { %v309_v32 = vsub.f32 1.0, %v308_v30 }
  0x3f   : > { %v310_v34 = vmul.f32 %v518_v29, %v309_v32 }
  0x41   : > { %v311_v36 = vadd.f32 %v518_v29, %v310_v34 }
  0x43   : > { %v315_v37 = vsel %vm314_vm7, %v518_v29, %v311_v36 }
  0x44   : > { %v320_v38 = vsel %vm317_vm8, %v319_v35, %v315_v37 }
  0x45   : > { %v322_v39 = vmul.f32 %v320_v38, %v302_v25 }
  0x47   : > { %v323_v40 = vpack.c.bf16 %v322_v39, %v322_v39 }
  0x49   : > { %325 = vst.msk [vmem:[%s616_s28] sm:$0xf] %vm324_vm9, %v323_v40 }
  0x4a PF: > { %s13_s16 = sadd.s32 1, %s557_s16   ;;  %s644_s12 = smov %s549_s14 }
  0x4b   : > { %p10_p8 = scmp.ge.s32.totalorder %s13_s16, 6   ;;  %s645_s13 = smov %s553_s15 }
  0x4c   : > { %s646_s14 = smov %s649_s17  ;;  %s647_s15 = smov %s653_s18 }
  0x4d   :  { %12 = sbr.rel (!%p10_p8) target bundleno = 3 (0x3), region = 72 }

// kernel: _lambda_.4
= control target key start
LH: loop header
LB: loop body
LE: loop exit
PB: predicated region body
PF: predicated region fallthrough
CT: control target
= control target key end

     0   :  { %vm70_vm0 = vcmask 261120   ;;  %s249_s1 = inlined_call_operand.vmem [shape: bf16[32,256], index: 1, kind: input, shape index: {}]   ;;  %s250_s0 = inlined_call_operand.vmem [shape: bf16[32,32], index: 0, kind: input, shape index: {}]   ;;  %s251_s2 = inlined_call_operand.vmem [shape: bf16[32,256], index: 2, kind: output, shape index: {}]  }
   0x1   :  { %v172_v0 = vld [vmem:[%s249_s1 + $0x10] sm:$0xf]  ;;  %v187_v1 = vld [vmem:[%s249_s1 + $0x14] sm:$0xf0]  ;;  %v186_v2 = vld [vmem:[%s249_s1 + $0x14] sm:$0xf] }
   0x2   :  { %v173_v3 = vor.u32 %v187_v1, %v172_v0  ;;  %v174_v4 = vld [vmem:[%s249_s1 + $0x18] sm:$0xf0]  ;;  %v164_v5 = vld [vmem:[%s249_s1] sm:$0xf]  ;;  %v185_v6 = vld [vmem:[%s249_s1 + $0x4] sm:$0xf0] }
   0x3   :  { %v177_v7 = vor.u32 %v186_v2, %v174_v4  ;;  %v184_v8 = vld [vmem:[%s249_s1 + $0x4] sm:$0xf]  ;;  %v166_v9 = vld [vmem:[%s249_s1 + $0x8] sm:$0xf0]  ;;  %v165_v10 = vor.u32 %v185_v6, %v164_v5 }
   0x4   :  { %83 = vmatpush.bf16.msra.mxu0 %v173_v3  ;;  %188 = vmatpush.bf16.msra.mxu2 %v173_v3  ;;  %v169_v11 = vor.u32 %v184_v8, %v166_v9  ;;  %v182_v12 = vld [vmem:[%s250_s0] sm:$0xff]  ;;  %v183_v13 = vld [vmem:[%s250_s0 + $0x8] sm:$0xff] }
   0x5   :  { %102 = vmatpush.bf16.msra.mxu1 %v177_v7  ;;  %190 = vmatpush.bf16.msra.mxu3 %v177_v7 }
   0x8   :  { %84 = vmatpush.bf16.msra.mxu0 %v165_v10  ;;  %189 = vmatpush.bf16.msra.mxu2 %v165_v10 }
   0x9   :  { %103 = vmatpush.bf16.msra.mxu1 %v169_v11  ;;  %191 = vmatpush.bf16.msra.mxu3 %v169_v11 }
   0xb   :  { %178 = vmatmul.msk.bf16.vlgmr.msra.gmra.mxu0 %vm70_vm0, %v182_v12  ;;  %179 = vmatmul.msk.bf16.vlgmr.msra.gmra.mxu2 %vm70_vm0, %v183_v13 }
   0xc   :  { %180 = vmatmul.msk.bf16.vlgmr.msra.gmra.mxu1 %vm70_vm0, %v182_v12  ;;  %181 = vmatmul.msk.bf16.vlgmr.msra.gmra.mxu3 %vm70_vm0, %v183_v13 }
  0x88   :  { %v86_v14 = vpop.f32.mrf.mxu0 }
  0x89   :  { %v105_v15 = vpop.f32.mrf.mxu1 }
  0x8a   :  { %v142_v16 = vpack.c.bf16 %v105_v15, %v86_v14 }
  0x8c   :  { %146 = vst [vmem:[%s251_s2] sm:$0xff] %v142_v16 }
  0x8e   :  { %v91_v17 = vpop.f32.mrf.mxu2 }
  0x8f   :  { %v110_v18 = vpop.f32.mrf.mxu3 }
  0x90   :  { %v144_v19 = vpack.c.bf16 %v110_v18, %v91_v17  ;;  %v88_v20 = vpop.f32.mrf.mxu0 }
  0x91   :  { %v107_v21 = vpop.f32.mrf.mxu1 }
  0x92   :  { %148 = vst [vmem:[%s251_s2 + $0x10] sm:$0xff] %v144_v19  ;;  %v143_v22 = vpack.c.bf16 %v107_v21, %v88_v20 }
  0x94   :  { %147 = vst [vmem:[%s251_s2 + $0x8] sm:$0xff] %v143_v22 }
  0x96   :  { %v93_v23 = vpop.f32.mrf.mxu2 }
  0x97   :  { %v112_v24 = vpop.f32.mrf.mxu3 }
  0x98   :  { %v145_v25 = vpack.c.bf16 %v112_v24, %v93_v23 }
  0x9a   :  { %149 = vst [vmem:[%s251_s2 + $0x18] sm:$0xff] %v145_v25 }

// kernel: _lambda_.7
= control target key start
LH: loop header
LB: loop body
LE: loop exit
PB: predicated region body
PF: predicated region fallthrough
CT: control target
= control target key end

     0   :  { %s589_s0 = inlined_call_operand.vmem [shape: bf16[32,64], index: 0, kind: input, shape index: {}]   ;;  %s590_s1 = inlined_call_operand.vmem [shape: bf16[32,64], index: 1, kind: input, shape index: {}]   ;;  %s591_s2 = inlined_call_operand.vmem [shape: f32[1,64], index: 2, kind: input, shape index: {}]   ;;  %s592_s3 = inlined_call_operand.vmem [shape: bf16[64,128], index: 3, kind: input, shape index: {}]   ;;  %s593_s4 = inlined_call_operand.hbm [shape: f32[32,128], index: 4, kind: output, shape index: {}]  }
   0x1   :  { %v457_v0 = vld [vmem:[%s590_s1 + $0x8] sm:$0xff]   ;;  %v463_v2 = vld [vmem:[%s590_s1] sm:$0xff]  }
   0x2   :  { %v360_v1 = vunpack.c.l.bf16 %v457_v0  ;;  %v361_v3 = vunpack.c.h.bf16 %v457_v0 }
   0x3   :  { %9 = vsyncpa [#allocation4], 0  ;;  %v356_v4 = vunpack.c.l.bf16 %v463_v2  ;;  %v357_v5 = vunpack.c.h.bf16 %v463_v2  ;;  %v479_v18 = vld [vmem:[%s589_s0 + $0x8] sm:$0xff]   ;;  %v347_v40 = vld [vmem:[%s589_s0] sm:$0xff]   ;;  %s298_s7 = sshll.u32 %s593_s4, 4  ;;  %s427_s8 = smov 128   ;;  %s299_s7 = int_to_ptr.hbm [resolvable:$true] %s298_s7 }
   0x4   :  { %v312_v6 = vmul.f32 -1.442695, %v360_v1  ;;  %v313_v7 = vmul.f32 -1.442695, %v361_v3  ;;  %v352_v26 = vunpack.c.l.bf16 %v479_v18  ;;  %v348_v52 = vunpack.c.l.bf16 %v347_v40  ;;  %s428_s9 = smov 8  }
   0x5   :  { %v310_v8 = vmul.f32 -1.442695, %v356_v4  ;;  %v311_v9 = vmul.f32 -1.442695, %v357_v5 }
   0x6   :  { %373 = vpow2.f32 %v312_v6 }
   0x7   :  { %375 = vpow2.f32 %v310_v8 }
   0x8   :  { %377 = vpow2.f32 %v313_v7 }
   0x9   :  { %379 = vpow2.f32 %v311_v9 }
   0xc   :  { %v374_v10 = vpop.eup %373 }
   0xd   :  { %v376_v11 = vpop.eup %375  ;;  %v53_v12 = vadd.f32 1.0, %v374_v10 }
   0xe   :  { %v378_v13 = vpop.eup %377  ;;  %v51_v14 = vadd.f32 1.0, %v376_v11 }
   0xf   :  { %v380_v15 = vpop.eup %379  ;;  %381 = vrcp.f32 %v53_v12  ;;  %v54_v16 = vadd.f32 1.0, %v378_v13  ;;  %v94_v19 = vand.u32 2147483647, %v53_v12  ;;  %v96_v20 = vand.u32 2147483648, %v53_v12 }
  0x10   :  { %383 = vrcp.f32 %v51_v14  ;;  %v52_v17 = vadd.f32 1.0, %v380_v15  ;;  %v64_v22 = vand.u32 2147483647, %v51_v14  ;;  %v66_v23 = vand.u32 2147483648, %v51_v14 }
  0x11   :  { %385 = vrcp.f32 %v54_v16  ;;  %vm90_vm0 = vweird.f32 %v53_v12  ;;  %vm60_vm1 = vweird.f32 %v51_v14  ;;  %vm482_vm3 = vcmp.eq.f32.partialorder %v94_v19, 8.507059e+37 }
  0x12   :  { %387 = vrcp.f32 %v52_v17  ;;  %v97_v30 = vor.u32 1.1754944e-38, %v96_v20  ;;  %vm486_vm5 = vcmp.eq.f32.partialorder %v64_v22, 8.507059e+37  ;;  %v67_v34 = vor.u32 1.1754944e-38, %v66_v23 }
  0x13   :  { %vm105_vm6 = vweird.f32 %v54_v16  ;;  %v109_v38 = vand.u32 2147483647, %v54_v16  ;;  %v111_v42 = vand.u32 2147483648, %v54_v16  ;;  %vm75_vm8 = vweird.f32 %v52_v17 }
  0x14   :  { %v81_v47 = vand.u32 2147483648, %v52_v17  ;;  %v79_v50 = vand.u32 2147483647, %v52_v17  ;;  %v349_v13 = vunpack.c.h.bf16 %v347_v40  ;;  %v342_v40 = vld [vmem:[%s592_s3] sm:$0xff] }
  0x15   :  { %v382_v21 = vpop.eup %381  ;;  %vm506_vm12 = vcmp.eq.f32.partialorder %v109_v38, 8.507059e+37  ;;  %v112_v58 = vor.u32 1.1754944e-38, %v111_v42  ;;  %v343_v38 = vld [vmem:[%s592_s3 + $0x8] sm:$0xff] }
  0x16   :  { %v384_v24 = vpop.eup %383  ;;  %v86_v25 = vmul.f32 %v382_v21, %v53_v12  ;;  %vm91_vm2 = vweird.f32 %v382_v21  ;;  %v82_v6 = vor.u32 1.1754944e-38, %v81_v47  ;;  %vm80_vm15 = vcmp.eq.f32.partialorder %v79_v50, 8.507059e+37 }
  0x17   :  { %v56_v27 = vmul.f32 %v384_v24, %v51_v14  ;;  %v386_v31 = vpop.eup %385  ;;  %vm61_vm4 = vweird.f32 %v384_v24  ;;  %vm491_vm7 = vmor %vm90_vm0, %vm91_vm2  ;;  %vm127_vm0 = vcmask 523264  }
  0x18   :  { %v87_v28 = vsub.f32 1.0, %v86_v25  ;;  %v388_v35 = vpop.eup %387  ;;  %v101_v37 = vmul.f32 %v386_v31, %v54_v16  ;;  %vm500_vm9 = vmor %vm60_vm1, %vm61_vm4  ;;  %vm106_vm10 = vweird.f32 %v386_v31 }
  0x19   :  { %v57_v32 = vsub.f32 1.0, %v56_v27  ;;  %v71_v43 = vmul.f32 %v388_v35, %v52_v17  ;;  %vm76_vm11 = vweird.f32 %v388_v35  ;;  %vm515_vm13 = vmor %vm105_vm6, %vm106_vm10 }
  0x1a   :  { %v88_v36 = vmul.f32 %v382_v21, %v87_v28  ;;  %v102_v46 = vsub.f32 1.0, %v101_v37  ;;  %vm524_vm14 = vmor %vm75_vm8, %vm76_vm11  ;;  %vm211_vm8 = vcmask 519168  }
  0x1b   :  { %v58_v41 = vmul.f32 %v384_v24, %v57_v32  ;;  %v72_v49 = vsub.f32 1.0, %v71_v43 }
  0x1c   :  { %v89_v44 = vadd.f32 %v382_v21, %v88_v36  ;;  %v103_v53 = vmul.f32 %v386_v31, %v102_v46 }
  0x1d   :  { %v59_v48 = vadd.f32 %v384_v24, %v58_v41  ;;  %v73_v59 = vmul.f32 %v388_v35, %v72_v49 }
  0x1e   :  { %v93_v51 = vsel %vm491_vm7, %v382_v21, %v89_v44  ;;  %v104_v62 = vadd.f32 %v386_v31, %v103_v53 }
  0x1f   :  { %v98_v55 = vsel %vm482_vm3, %v97_v30, %v93_v51  ;;  %v63_v56 = vsel %vm500_vm9, %v384_v24, %v59_v48  ;;  %v74_v8 = vadd.f32 %v388_v35, %v73_v59  ;;  %v345_v30 = vld [vmem:[%s592_s3 + $0x18] sm:$0xff] }
  0x20   :  { %v117_v60 = vmul.f32 %v360_v1, %v98_v55  ;;  %v68_v61 = vsel %vm486_vm5, %v67_v34, %v63_v56  ;;  %v353_v1 = vunpack.c.h.bf16 %v479_v18  ;;  %v108_v10 = vsel %vm515_vm13, %v386_v31, %v104_v62  ;;  %273 = vmatpush.bf16.msra.mxu0 %v345_v30  ;;  %364 = vmatpush.bf16.msra.mxu1 %v345_v30 }
  0x21   :  { %v115_v7 = vmul.f32 %v356_v4, %v68_v61  ;;  %v113_v12 = vsel %vm506_vm12, %v112_v58, %v108_v10  ;;  %v78_v14 = vsel %vm524_vm14, %v388_v35, %v74_v8  ;;  %v344_v35 = vld [vmem:[%s592_s3 + $0x10] sm:$0xff] }
  0x22   :  { %v530_v9 = vmul.f32 %v352_v26, %v117_v60  ;;  %v118_v15 = vmul.f32 %v361_v3, %v113_v12  ;;  %v83_v16 = vsel %vm80_vm15, %v82_v6, %v78_v14  ;;  %v372_v60 = vld [vmem:[%s591_s2] ss:$0 sm:$0xff]  ;;  %s426_s2 = smov [#allocation3]  }
  0x23   :  { %v535_v11 = vmul.f32 %v348_v52, %v115_v7  ;;  %v116_v18 = vmul.f32 %v357_v5, %v83_v16  ;;  %v425_v5 = vmov 64.0   ;;  %s296_s30 = sshll.u32 %s426_s2, 4  ;;  %s297_s30 = int_to_ptr.vmem [resolvable:$true] %s296_s30 }
  0x24   :  { %v125_v4 = vmul.f32 %v530_v9, %v530_v9  ;;  %v550_v20 = vmul.f32 %v353_v1, %v118_v15  ;;  %389 = vrcp.f32 %v425_v5  ;;  %274 = vmatpush.bf16.msra.mxu0 %v344_v35  ;;  %365 = vmatpush.bf16.msra.mxu1 %v344_v35 }
  0x25   :  { %v123_v17 = vmul.f32 %v535_v11, %v535_v11  ;;  %v553_v22 = vmul.f32 %v349_v13, %v116_v18 }
  0x26   :  { %v134_v19 = vsel %vm127_vm0, %v125_v4, 0.0  ;;  %v126_v0 = vmul.f32 %v550_v20, %v550_v20 }
  0x27   :  { %135 = vadd.xlane.f32.xlu1 %v134_v19  ;;  %v128_v21 = vsel %vm127_vm0, %v123_v17, 0.0  ;;  %v124_v3 = vmul.f32 %v553_v22, %v553_v22 }
  0x28   :  { %129 = vadd.xlane.f32.xlu0 %v128_v21  ;;  %v137_v23 = vsel %vm127_vm0, %v126_v0, 0.0  ;;  %275 = vmatpush.bf16.msra.mxu0 %v343_v38 }
  0x29   :  { %v131_v2 = vsel %vm127_vm0, %v124_v3, 0.0  ;;  %366 = vmatpush.bf16.msra.mxu1 %v343_v38 }
  0x2a   :  { %v390_v24 = vpop.eup %389 }
  0x2b   :  { %v141_v25 = vmul.f32 64.0, %v390_v24  ;;  %vm145_vm1 = vweird.f32 %v390_v24 }
  0x2c   :  { %276 = vmatpush.bf16.msra.mxu0 %v342_v40 }
  0x2d   :  { %v142_v26 = vsub.f32 1.0, %v141_v25  ;;  %367 = vmatpush.bf16.msra.mxu1 %v342_v40 }
  0x2f   :  { %138 = vadd.xlane.f32.xlu1 %v137_v23  ;;  %v143_v27 = vmul.f32 %v390_v24, %v142_v26 }
  0x30   :  { %132 = vadd.xlane.f32.xlu0 %v131_v2 }
  0x31   :  { %v144_v28 = vadd.f32 %v390_v24, %v143_v27 }
  0x33   :  { %v146_v29 = vsel %vm145_vm1, %v390_v24, %v144_v28 }
  0x9a   :  { %v136_v31 = vpop.xlane.xlu1 %135 }
  0x9b   :  { %v149_v32 = vmul.f32 %v146_v29, %v136_v31  ;;  %v130_v33 = vpop.xlane.xlu0 %129 }
  0x9c   :  { %v147_v34 = vmul.f32 %v146_v29, %v130_v33 }
  0x9d   :  { %v153_v36 = vadd.f32 1e-05, %v149_v32 }
  0x9e   :  { %v151_v37 = vadd.f32 1e-05, %v147_v34 }
  0x9f   :  { %391 = vrsqrt.f32 %v153_v36  ;;  %vm181_vm4 = vweird.f32 %v153_v36 }
  0xa0   :  { %393 = vrsqrt.f32 %v151_v37  ;;  %vm161_vm6 = vweird.f32 %v151_v37 }
  0xa2   :  { %v139_v39 = vpop.xlane.xlu1 %138 }
  0xa3   :  { %v150_v41 = vmul.f32 %v146_v29, %v139_v39  ;;  %v133_v42 = vpop.xlane.xlu0 %132 }
  0xa4   :  { %v148_v43 = vmul.f32 %v146_v29, %v133_v42 }
  0xa5   :  { %v392_v44 = vpop.eup %391  ;;  %v154_v45 = vadd.f32 1e-05, %v150_v41 }
  0xa6   :  { %v394_v46 = vpop.eup %393  ;;  %v176_v47 = vmul.f32 %v392_v44, %v153_v36  ;;  %v152_v48 = vadd.f32 1e-05, %v148_v43  ;;  %vm182_vm2 = vweird.f32 %v392_v44 }
  0xa7   :  { %v156_v49 = vmul.f32 %v394_v46, %v151_v37  ;;  %395 = vrsqrt.f32 %v154_v45  ;;  %vm162_vm3 = vweird.f32 %v394_v46  ;;  %vm183_vm5 = vmor %vm181_vm4, %vm182_vm2  ;;  %vm191_vm11 = vweird.f32 %v154_v45 }
  0xa8   :  { %v177_v50 = vmul.f32 %v392_v44, %v176_v47  ;;  %397 = vrsqrt.f32 %v152_v48  ;;  %vm163_vm7 = vmor %vm161_vm6, %vm162_vm3  ;;  %vm171_vm13 = vweird.f32 %v152_v48 }
  0xa9   :  { %v157_v51 = vmul.f32 %v394_v46, %v156_v49 }
  0xaa   :  { %v178_v52 = vmul.f32 0.5, %v177_v50 }
  0xab   :  { %v158_v53 = vmul.f32 0.5, %v157_v51 }
  0xac   :  { %v179_v54 = vsub.f32 1.5, %v178_v52 }
  0xad   :  { %v396_v55 = vpop.eup %395  ;;  %v159_v56 = vsub.f32 1.5, %v158_v53 }
  0xae   :  { %v398_v57 = vpop.eup %397  ;;  %v180_v58 = vmul.f32 %v392_v44, %v179_v54  ;;  %v186_v59 = vmul.f32 %v396_v55, %v154_v45  ;;  %vm192_vm9 = vweird.f32 %v396_v55 }
  0xaf   :  { %v160_v61 = vmul.f32 %v394_v46, %v159_v56  ;;  %v166_v62 = vmul.f32 %v398_v57, %v152_v48  ;;  %vm172_vm10 = vweird.f32 %v398_v57  ;;  %vm193_vm12 = vmor %vm191_vm11, %vm192_vm9 }
  0xb0   :  { %v184_v63 = vsel %vm183_vm5, %v392_v44, %v180_v58  ;;  %v187_v6 = vmul.f32 %v396_v55, %v186_v59  ;;  %vm173_vm14 = vmor %vm171_vm13, %vm172_vm10 }
  0xb1   :  { %v197_v7 = vmul.f32 %v184_v63, %v530_v9  ;;  %v164_v8 = vsel %vm163_vm7, %v394_v46, %v160_v61  ;;  %v167_v1 = vmul.f32 %v398_v57, %v166_v62 }
  0xb2   :  { %v195_v10 = vmul.f32 %v164_v8, %v535_v11  ;;  %v188_v12 = vmul.f32 0.5, %v187_v6 }
  0xb3   :  { %v205_v13 = vmul.f32 %v372_v60, %v197_v7  ;;  %v168_v14 = vmul.f32 0.5, %v167_v1 }
  0xb4   :  { %v203_v4 = vmul.f32 %v372_v60, %v195_v10  ;;  %v189_v15 = vsub.f32 1.5, %v188_v12 }
  0xb5   :  { %v209_v16 = vpack.c.bf16 %v205_v13, %v205_v13  ;;  %v169_v17 = vsub.f32 1.5, %v168_v14 }
  0xb6   :  { %v207_v18 = vpack.c.bf16 %v203_v4, %v203_v4  ;;  %v190_v19 = vmul.f32 %v396_v55, %v189_v15 }
  0xb7   :  { %214 = vst.msk [vmem:[#allocation2 + $0x8] sm:$0xf] %vm211_vm8, %v209_v16  ;;  %v170_v9 = vmul.f32 %v398_v57, %v169_v17 }
  0xb8   :  { %212 = vst.msk [vmem:[#allocation2] sm:$0xf] %vm211_vm8, %v207_v18  ;;  %v194_v11 = vsel %vm193_vm12, %v396_v55, %v190_v19 }
  0xb9   :  { %v198_v21 = vmul.f32 %v194_v11, %v550_v20  ;;  %v174_v0 = vsel %vm173_vm14, %v398_v57, %v170_v9 }
  0xba   :  { %v196_v3 = vmul.f32 %v174_v0, %v553_v22 }
  0xbb   :  { %v206_v23 = vmul.f32 %v372_v60, %v198_v21 }
  0xbc   :  { %v204_v2 = vmul.f32 %v372_v60, %v196_v3 }
  0xbd   :  { %v210_v5 = vpack.c.bf16 %v206_v23, %v206_v23 }
  0xbe   :  { %v208_v24 = vpack.c.bf16 %v204_v2, %v204_v2 }
  0xbf   :  { %215 = vst.msk [vmem:[#allocation2 + $0xc] sm:$0xf] %vm211_vm8, %v210_v5 }
  0xc0   :  { %213 = vst.msk [vmem:[#allocation2 + $0x4] sm:$0xf] %vm211_vm8, %v208_v24 }
  0xc6   :  { %v341_v25 = vld [vmem:[#allocation2 + $0x8] sm:$0xff] }
  0xc7   :  { %v340_v26 = vld [vmem:[#allocation2] sm:$0xff]  ;;  %339 = vmatmul.msk.bf16.vlgmr.msra.gmra.mxu1 %vm127_vm0, %v341_v25 }
  0xc8   :  { %338 = vmatmul.msk.bf16.vlgmr.msra.gmra.mxu0 %vm127_vm0, %v340_v26 }
 0x144   :  { %v283_v27 = vpop.f32.mrf.mxu1 }
 0x145   :  { %v278_v28 = vpop.f32.mrf.mxu0  ;;  %290 = vst [vmem:[#allocation3 + $0x10] sm:$0xff] %v283_v27 }
 0x146   :  { %288 = vst [vmem:[#allocation3] sm:$0xff] %v278_v28 }
 0x14c   :  { %v285_v20 = vpop.f32.mrf.mxu1 }
 0x14d   :  { %v280_v22 = vpop.f32.mrf.mxu0  ;;  %291 = vst [vmem:[#allocation3 + $0x18] sm:$0xff] %v285_v20 }
 0x14e   :  { %289 = vst [vmem:[#allocation3 + $0x8] sm:$0xff] %v280_v22 }
 0x14f   :  { %304 = dma.vmem_to_hbm [thread:$0]  %s297_s30, 512, %s299_s7, [#allocation4], %s427_s8, %s427_s8, %s428_s9  }
 0x150   :  { %423 = dma.done.wait [#allocation4], 512  }
 0x151   :  { %424 = vsyncadd [#allocation4], 4294966784 }
 0x152   :  { %309 = vsyncpa [#allocation4], 1 }

// kernel: _lambda_.6
= control target key start
LH: loop header
LB: loop body
LE: loop exit
PB: predicated region body
PF: predicated region fallthrough
CT: control target
= control target key end

     0   :  { %s2117_s0 = inlined_call_operand.vmem [shape: bf16[2,16,64], index: 0, kind: input, shape index: {}]   ;;  %s2118_s1 = inlined_call_operand.vmem [shape: bf16[2,16,16], index: 1, kind: input, shape index: {}]   ;;  %s2119_s2 = inlined_call_operand.vmem [shape: bf16[2,16,16], index: 2, kind: input, shape index: {}]   ;;  %s2120_s3 = inlined_call_operand.vmem [shape: f32[2,4,2,8,1], index: 3, kind: input, shape index: {}]   ;;  %s2121_s4 = inlined_call_operand.vmem [shape: f32[2,4,2,8,1], index: 4, kind: input, shape index: {}]   ;;  %s2122_s5 = inlined_call_operand.vmem [shape: f32[2,4,2,1,8], index: 5, kind: input, shape index: {}]   ;;  %s2123_s6 = inlined_call_operand.vmem [shape: f32[4,1,1], index: 6, kind: input, shape index: {}]   ;;  %s2124_s7 = inlined_call_operand.vmem [shape: bf16[2,16,64], index: 7, kind: output, shape index: {}]  }
   0x1   :  { %2125 = sst [smem:[#allocation6_spill]] %s2120_s3 }
   0x2   :  { %2126 = sst [smem:[#allocation7_spill]] %s2121_s4 }
   0x3   :  { %s1777_s24 = smov 0   ;;  %s1779_s25 = smov 0  }
   0x4   :  { %s1781_s26 = smov 0   ;;  %s1783_s27 = smov 0  }
   0x5   :  { %s1785_s28 = smov 0   ;;  %s1787_s29 = smov 0  }
   0x6   :  { %s1789_s30 = smov 0  }
   0x7 LB: > { %s29_s8 = sadd.s32 1, %s1719_s28  ;;  %s36_s9 = sadd.s32 1, %s1723_s29  ;;  %s1727_s30 = sphi %s1789_s30, %s17_s30   ;;  %s1723_s29 = sphi %s1787_s29, %s2135_s29   ;;  %s1719_s28 = sphi %s1785_s28, %s2134_s28   ;;  %s1715_s27 = sphi %s1783_s27, %s2133_s27   ;;  %s1711_s26 = sphi %s1781_s26, %s2132_s26   ;;  %s1707_s25 = sphi %s1779_s25, %s2131_s25   ;;  %s1703_s24 = sphi %s1777_s24, %s2130_s24  }
   0x8   : > { %p30_p0 = scmp.ge.s32.totalorder %s29_s8, 2  ;;  %p140_p1 = scmp.ne.s32.totalorder %s1707_s25, %s1703_s24 }
   0x9   : > { %p141_p2 = scmp.eq.s32.totalorder %s1727_s30, 0  ;;  %s133_s14 = sadd.s32 1, %s1707_s25 }
   0xa   : > { %s2137_s8 = smov (%p30_p0, %s29_s8), 0  ;;  %s2139_s9 = smov (!%p30_p0, %s36_s9), %s1723_s29 }
   0xb   : > { %p1820_p3 = por %p141_p2, %p140_p1  ;;  %p38_p4 = scmp.ge.s32.totalorder %s2139_s9, 2 }
   0xc   : > { %s129_s11 = ssub.s32 %s1719_s28, %s2137_s8  ;;  %p1514_p6 = scmp.ge.s32.totalorder %s1727_s30, 4 }
   0xd   : > { %s2141_s9 = smov (%p38_p4, %s2139_s9), 0 }
   0xe   : > { %s126_s12 = ssub.s32 %s1723_s29, %s2141_s9  ;;  %290 = sbr.rel (%p1514_p6) target bundleno = 56 (0x38), region = 20 }
   0xf   : > { %s130_s13 = sor.u32 %s129_s11, %s126_s12 }
  0x10   : > { %p131_p5 = scmp.eq.s32.totalorder %s130_s13, 0 }
  0x12   : > { %s1832_s15 = scalar_select %p131_p5, %s1707_s25, %s133_s14  }
  0x13   : > { %329 = sbr.rel (!%p1820_p3) target bundleno = 33 (0x21), region = 36  ;;  %s331_s16 = sand.u32 (%p1820_p3), 1, %s1707_s25  }
  0x14   : > { %s1516_s17 = sshll.u32 (%p1820_p3), %s1723_s29, 3  ;;  %s1515_s18 = sshll.u32 (%p1820_p3), %s331_s16, 5 }
  0x15   : > { %s338_s19 = sadd.s32 (%p1820_p3), %s1719_s28, %s1516_s17  ;;  %s2128_s3 = sld [smem:[#allocation6_spill]] (%p1820_p3) }
  0x16   : > { %s1517_s20 = sshll.u32 (%p1820_p3), %s338_s19, 3  ;;  %s333_s11 = scalar_lea.vmem (%p1820_p3), [#allocation3], %s1515_s18 }
  0x1b   : > { %s340_s23 = scalar_lea.vmem %s2128_s3, %s1517_s20 }
  0x1c   : > { %v375_v0 = vld [vmem:[%s340_s23] sm:$0xff]  ;;  %v377_v1 = vld [vmem:[%s340_s23 + $0x10] sm:$0xff] }
  0x1d   : > { %v379_v2 = vld [vmem:[%s340_s23 + $0x20] sm:$0xff]  ;;  %376 = vst [vmem:[%s333_s11] sm:$0xff] %v375_v0  ;;  %v381_v3 = vld [vmem:[%s340_s23 + $0x30] sm:$0xff] }
  0x1e   : > { %378 = vst [vmem:[%s333_s11 + $0x8] sm:$0xff] %v377_v1 }
  0x1f   : > { %380 = vst [vmem:[%s333_s11 + $0x10] sm:$0xff] %v379_v2 }
  0x20   : > { %382 = vst [vmem:[%s333_s11 + $0x18] sm:$0xff] %v381_v3 }
  0x21 PF: > { %388 = sbr.rel (!%p1820_p3) target bundleno = 47 (0x2f), region = 74  ;;  %s390_s12 = sand.u32 (%p1820_p3), 1, %s1707_s25  }
  0x22   : > { %s1519_s13 = sshll.u32 (%p1820_p3), %s1723_s29, 3  ;;  %s1518_s14 = sshll.u32 (%p1820_p3), %s390_s12, 5 }
  0x23   : > { %s397_s16 = sadd.s32 (%p1820_p3), %s1719_s28, %s1519_s13  ;;  %s2129_s4 = sld [smem:[#allocation7_spill]] (%p1820_p3) }
  0x24   : > { %s1520_s17 = sshll.u32 (%p1820_p3), %s397_s16, 3  ;;  %s392_s21 = scalar_lea.vmem (%p1820_p3), [#allocation4], %s1518_s14 }
  0x29   : > { %s399_s18 = scalar_lea.vmem %s2129_s4, %s1520_s17 }
  0x2a   : > { %v434_v4 = vld [vmem:[%s399_s18] sm:$0xff]  ;;  %v436_v5 = vld [vmem:[%s399_s18 + $0x10] sm:$0xff] }
  0x2b   : > { %v438_v6 = vld [vmem:[%s399_s18 + $0x20] sm:$0xff]  ;;  %435 = vst [vmem:[%s392_s21] sm:$0xff] %v434_v4  ;;  %v440_v7 = vld [vmem:[%s399_s18 + $0x30] sm:$0xff] }
  0x2c   : > { %437 = vst [vmem:[%s392_s21 + $0x8] sm:$0xff] %v436_v5 }
  0x2d   : > { %439 = vst [vmem:[%s392_s21 + $0x10] sm:$0xff] %v438_v6 }
  0x2e   : > { %441 = vst [vmem:[%s392_s21 + $0x18] sm:$0xff] %v440_v7 }
  0x2f PF: > { %447 = sbr.rel (!%p1820_p3) target bundleno = 56 (0x38), region = 112  ;;  %s449_s22 = sand.u32 (%p1820_p3), 1, %s1707_s25  }
  0x30   : > { %s1522_s23 = sshll.u32 (%p1820_p3), %s1723_s29, 3  ;;  %s1521_s11 = sshll.u32 (%p1820_p3), %s449_s22, 2 }
  0x31   : > { %s456_s12 = sadd.s32 (%p1820_p3), %s1719_s28, %s1522_s23  ;;  %s451_s17 = scalar_lea.vmem (%p1820_p3), [#allocation5], %s1521_s11 }
  0x32   : > { %s457_s14 = scalar_lea.vmem (%p1820_p3), %s2122_s5, %s456_s12 }
  0x33   : > { %v474_v8 = vld [vmem:[%s457_s14] sm:$0x1] (%p1820_p3)  ;;  %v476_v9 = vld [vmem:[%s457_s14 + $0x2] sm:$0x1] (%p1820_p3)  ;;  %v478_v10 = vld [vmem:[%s457_s14 + $0x4] sm:$0x1] (%p1820_p3) }
  0x34   : > { %475 = vst [vmem:[%s451_s17] sm:$0x1] %v474_v8  ;;  %v480_v11 = vld [vmem:[%s457_s14 + $0x6] sm:$0x1] }
  0x35   : > { %477 = vst [vmem:[%s451_s17 + $0x1] sm:$0x1] %v476_v9 }
  0x36   : > { %479 = vst [vmem:[%s451_s17 + $0x2] sm:$0x1] %v478_v10 }
  0x37   : > { %481 = vst [vmem:[%s451_s17 + $0x3] sm:$0x1] %v480_v11 }
  0x38 PF: > { %p1523_p7 = scmp.ge.s32.totalorder %s1727_s30, 1  ;;  %p504_p8 = scmp.lt.s32.totalorder %s1727_s30, 5 }
  0x3a   : > { %p505_p9 = pnand %p1523_p7, %p504_p8 }
  0x3b   : > { %s511_s10 = sand.u32 (!%p505_p9), 1, %s1703_s24   ;;  %p601_p10 = scmp.lt.s32.totalorder (!%p505_p9), %s1715_s27, 1 }
  0x3c   : > { %508 = sbr.rel (%p505_p9) target bundleno = 797 (0x31d), region = 146  ;;  %s1524_s19 = sshll.u32 (!%p505_p9), %s511_s10, 5 }
  0x3d   : > { %s1526_s20 = sshll.u32 (!%p505_p9), %s511_s10, 2  ;;  %p603_p11 = scmp.lt.s32.totalorder (!%p505_p9), %s1711_s26, 1 }
  0x3e   : > { %s1886_s4 = scalar_lea.vmem (!%p505_p9), [#allocation4], %s1524_s19  ;;  %s1888_s11 = scalar_lea.vmem (!%p505_p9), [#allocation5], %s1526_s20 }
  0x3f   : > { %p1535_p12 = scmp.ne.s32.totalorder (!%p505_p9), %s1711_s26, 0 }
  0x41   : > { %s2143_s27 = smov (!%p601_p10, %s1715_s27), 1 }
  0x42   : > { %s604_s18 = scalar_select %p603_p11, %s1711_s26, 1 }
  0x43   : > { %s1527_s21 = sshll.u32 %s2143_s27, 1  ;;  %651 = sbr.rel (%p1535_p12) target bundleno = 81 (0x51), region = 162 }
  0x44   : > { %s609_s22 = sadd.s32 %s1527_s21, %s604_s18 }
  0x45   : > { %s1866_s23 = sshll.u32 %s609_s22, 2  ;;  %s1884_s22 = scalar_lea.vmem [#allocation3], %s1524_s19 }
  0x46   : > { %s611_s13 = scalar_lea.vmem %s2117_s0, %s1866_s23  ;;  %s619_s14 = scalar_lea.vmem %s2118_s1, %s1866_s23 }
  0x47   : > { %s627_s3 = scalar_lea.vmem %s2119_s2, %s1866_s23  ;;  %s646_s21 = scalar_lea.vmem %s2124_s7, %s1866_s23 }
  0x48   : > { %vm652_vm0 = vcmask 130048   ;;  %v1729_v12 = vmov 0.0  }
  0x49   : > { %653 = vst.msk [vmem:[#allocation2] sm:$0xff] %vm652_vm0, %v1729_v12 }
  0x4a   : > { %654 = vst.msk [vmem:[#allocation2 + $0x8] sm:$0xff] %vm652_vm0, %v1729_v12 }
  0x4b   : > { %655 = vst.msk [vmem:[#allocation2 + $0x10] sm:$0xff] %vm652_vm0, %v1729_v12 }
  0x4c   : > { %656 = vst.msk [vmem:[#allocation2 + $0x18] sm:$0xff] %vm652_vm0, %v1729_v12 }
  0x4d   : > { %657 = vst.msk [vmem:[#allocation2 + $0x20] sm:$0xff] %vm652_vm0, %v1729_v12 }
  0x4e   : > { %658 = vst.msk [vmem:[#allocation2 + $0x28] sm:$0xff] %vm652_vm0, %v1729_v12 }
  0x4f   : > { %659 = vst.msk [vmem:[#allocation2 + $0x30] sm:$0xff] %vm652_vm0, %v1729_v12 }
  0x50   : > { %660 = vst.msk [vmem:[#allocation2 + $0x38] sm:$0xff] %vm652_vm0, %v1729_v12 }
  0x51 PF: > { %v691_v13 = vld [vmem:[%s1886_s4] sm:$0xff]  ;;  %vm664_vm1 = vcmask 130048   ;;  %vm745_vm2 = vcmask 1043456   ;;  %v1730_v15 = vmov 0   ;;  %v1901_v22 = vld [vmem:[#allocation2 + $0x8] sm:$0xff]  ;;  %v1926_v34 = vld [vmem:[%s1886_s4 + $0x18] sm:$0xff]  ;;  %v684_v49 = vlaneseq }
  0x52   : > { %v662_v14 = vld [vmem:[%s619_s14] sm:$0xf]  ;;  %1635 = vset.pattern.permute.xlu0 %v1730_v15  ;;  %1636 = vset.pattern.permute.xlu1 %v1730_v15  ;;  %v733_v16 = vmul.f32 1.442695, %v691_v13  ;;  %v771_v17 = vperm.slane %v691_v13, 7  ;;  %v1907_v25 = vld [vmem:[%s1886_s4 + $0x8] sm:$0xff] }
  0x53   : > { %v669_v18 = vsel %vm664_vm1, %v662_v14, 0  ;;  %v1894_v19 = vsel %vm745_vm2, %v662_v14, 0  ;;  %v1896_v20 = vld [vmem:[#allocation2] sm:$0xff]  ;;  %695 = vperm.xlu0 %1635, %v691_v13   ;;  %1637 = vset.pattern.permute.xlu2 %v1730_v15  ;;  %v918_v28 = vperm.slane %v1907_v25, 7  ;;  %v1930_v35 = vld [vmem:[%s1886_s4 + $0x10] sm:$0xff]  ;;  %v1216_v37 = vperm.slane %v1926_v34, 7 }
  0x54   : > { %678 = vmatpush.bf16.xpose.msra.mxu0 %v669_v18  ;;  %v1641_v21 = vld [vmem:[%s2123_s6] ss:$0 sm:$0xff]  ;;  %1649 = vpow2.f32 %v733_v16  ;;  %v716_v23 = vpack.c.bf16 %v1901_v22, %v1896_v20  ;;  %v772_v24 = vsub.f32 %v771_v17, %v691_v13  ;;  %810 = vmatpush.bf16.msra.mxu3 %v1894_v19  ;;  %v1540_v38 = vld [vmem:[%s1884_s22 + $0x8] sm:$0xff]  ;;  %v1067_v39 = vperm.slane %v1930_v35, 7  ;;  %v1547_v44 = vld [vmem:[%s1884_s22 + $0x10] sm:$0xff]  ;;  %s1732_s16 = smov 96  }
  0x55   : > { %766 = vperm.xlu1 %1636, %v1641_v21   ;;  %v1916_v27 = vld [vmem:[%s627_s3] sm:$0xf]  ;;  %v919_v31 = vsub.f32 %v918_v28, %v1907_v25  ;;  %v1217_v41 = vsub.f32 %v1216_v37, %v1926_v34  ;;  %v1554_v46 = vld [vmem:[%s1884_s22 + $0x18] sm:$0xff]  ;;  %v1944_v51 = vshrl.u32 %v684_v49, 7  ;;  %v1946_v52 = vand.u32 127, %v684_v49  ;;  %v1972_v14 = vld [vmem:[#allocation2 + $0x10] sm:$0xff] }
  0x56   : > { %v718_v26 = vsel %vm664_vm1, %v716_v23, 0  ;;  %v773_v29 = vmul.f32 1.442695, %v772_v24  ;;  %v690_v30 = vld [vmem:[%s1884_s22] sm:$0xff]  ;;  %v1068_v42 = vsub.f32 %v1067_v39, %v1930_v35  ;;  %vm741_vm4 = vcmask 64512   ;;  %v1974_v15 = vld [vmem:[#allocation2 + $0x18] sm:$0xff] }
  0x57   : > { %727 = vmatpush.bf16.xpose.msra.mxu1 %v718_v26  ;;  %v920_v33 = vmul.f32 1.442695, %v919_v31  ;;  %v1218_v43 = vmul.f32 1.442695, %v1217_v41  ;;  %v1642_v50 = vld [vmem:[%s1888_s11] ss:$0 sm:$0xff]  ;;  %vm688_vm3 = vcmp.ge.s32.totalorder %v1944_v51, %v1946_v52  ;;  %v857_v18 = vpack.c.bf16 %v1974_v15, %v1972_v14 }
  0x58   : > { %1651 = vpow2.f32 %v773_v29  ;;  %v1069_v45 = vmul.f32 1.442695, %v1068_v42  ;;  %v661_v56 = vld [vmem:[%s611_s13] sm:$0xf]  ;;  %s1731_s13 = smov 112   ;;  %v1980_v21 = vld [vmem:[#allocation2 + $0x28] sm:$0xff] }
  0x59   : > { %1653 = vpow2.f32 %v920_v33  ;;  %v1960_v58 = vunpack.c.l.bf16 %v661_v56  ;;  %v1976_v16 = vld [vmem:[#allocation2 + $0x20] sm:$0xff]  ;;  %v859_v28 = vsel %vm664_vm1, %v857_v18, 0  ;;  %s1733_s24 = smov 80   ;;  %v874_v49 = vmul.f32 1.442695, %v1907_v25  ;;  %s1734_s12 = smov 16  }
  0x5a   : > { %v1921_v32 = vpop.eup %1649  ;;  %1655 = vpow2.f32 %v1218_v43  ;;  %v1006_v24 = vpack.c.bf16 %v1980_v21, %v1976_v16  ;;  %v1644_v18 = vld [vmem:[%s1888_s11 + $0x1] ss:$0 sm:$0xff]  ;;  %s1735_s3 = smov 32   ;;  %s1736_s4 = smov 48   ;;  %vm1287_vm5 = vcmask 261120   ;;  %vm1289_vm6 = vcmask 392192  }
  0x5b   : > { %1536 = vmatmul.msk.bf16.vlgmr.msra.gmra.mxu0 %vm664_vm1, %v1916_v27  ;;  %707 = vperm.xlu0 %1635, %v690_v30   ;;  %1657 = vpow2.f32 %v1069_v45  ;;  %vm1292_vm7 = vcmask 519168  }
  0x5c   : > { %959 = vmatpush.bf16.msrb.mxu0 %v1894_v19  ;;  %v1008_v33 = vsel %vm664_vm1, %v1006_v24, 0 }
  0x5d   : > { %737 = vperm.xlu1 %1636, %v1921_v32  }
  0x5e   : > { %v1652_v36 = vpop.eup %1651  ;;  %1537 = vmatmul.msk.bf16.vlgmr.msra.gmra.mxu1 %vm664_vm1, %v1916_v27 }
  0x5f   : > { %777 = vperm.xlu2 %1637, %v1652_v36   ;;  %v1654_v40 = vpop.eup %1653  ;;  %1017 = vmatpush.bf16.xpose.msrb.mxu1 %v1008_v33 }
  0x60   : > { %v1656_v47 = vpop.eup %1655 }
  0x61   : > { %v1658_v48 = vpop.eup %1657 }
  0x63   : > { %847 = vperm.xlu0 %1635, %v1540_v38  }
  0x65   : > { %924 = vperm.xlu1 %1636, %v1654_v40  }
  0x6b   : > { %996 = vperm.xlu0 %1635, %v1547_v44  }
  0x6d   : > { %1145 = vperm.xlu1 %1636, %v1554_v46   ;;  %v1643_v46 = vld [vmem:[%s1888_s11 + $0x3] ss:$0 sm:$0xff] }
  0x6e   : > { %1550 = vmatmul.msk.bf16.vlgmr.msrb.gmra.mxu1 %vm664_vm1, %v1916_v27 }
  0x73   : > { %1222 = vperm.xlu0 %1635, %v1656_v47  }
  0x75   : > { %1073 = vperm.xlu1 %1636, %v1658_v48  }
  0x7b   : > { %1133 = vperm.xlu0 %1635, %v1926_v34  }
  0x7d   : > { %835 = vperm.xlu1 %1636, %v1907_v25  }
  0xb9   : > { %v778_v61 = vpop.permute.xlu2 %777 }
  0xc5   : > { %v696_v53 = vpop.permute.xlu0 %695 }
  0xc6   : > { %v701_v54 = vsub.f32 %v696_v53, %v1642_v50  ;;  %v1645_v50 = vld [vmem:[%s2123_s6 + $0x3] ss:$0 sm:$0xff] }
  0xc7   : > { %v1950_v55 = vpop.permute.xlu1 %766 }
  0xc8   : > { %v702_v57 = vsel %vm688_vm3, %v701_v54, -inf }
  0xc9   : > { %v703_v59 = vmul.f32 1.442695, %v702_v57  ;;  %v1023_v57 = vmul.f32 1.442695, %v1930_v35 }
  0xcb   : > { %1659 = vpow2.f32 %v703_v59 }
  0xcc   : > { %1661 = vpow2.f32 %v874_v49 }
  0xcd   : > { %v708_v60 = vpop.permute.xlu0 %707 }
  0xce   : > { %v710_v62 = vmul.f32 %v708_v60, %v1960_v58 }
  0xcf   : > { %v738_v63 = vpop.permute.xlu1 %737 }
  0xd0   : > { %v780_v0 = vmul.f32 %v778_v61, %v710_v62  ;;  %v713_v1 = vpack.c.bf16 %v710_v62, %v710_v62  ;;  %v1172_v61 = vmul.f32 1.442695, %v1926_v34 }
  0xd1   : > { %v1660_v6 = vpop.eup %1659 }
  0xd2   : > { %v781_v2 = vpack.c.bf16 %v780_v0, %v780_v0  ;;  %v747_v3 = vsel %vm745_vm2, %v713_v1, 0  ;;  %v2007_v59 = vpop.eup %1661 }
  0xd3   : > { %756 = vmatpush.bf16.msra.mxu2 %v747_v3 }
  0xd4   : > { %782 = vxpose.xlu2.c.b16.start.end [1/1] (short) (narrow) %v781_v2, 16 }
  0xd5   : > { %v848_v4 = vpop.permute.xlu0 %847 }
  0xd6   : > { %v850_v5 = vmul.f32 %v848_v4, %v1960_v58 }
  0xd7   : > { %v925_v7 = vpop.permute.xlu1 %924  ;;  %868 = vmatpush.bf16.xpose.msrb.mxu2 %v859_v28 }
  0xd8   : > { %v1965_v8 = vpop.f32.mrf.mxu0  ;;  %v853_v9 = vpack.c.bf16 %v850_v5, %v850_v5  ;;  %v927_v38 = vmul.f32 %v925_v7, %v850_v5 }
  0xd9   : > { %v711_v10 = vmul.f32 %v1660_v6, %v1965_v8 }
  0xda   : > { %883 = vrot.lane.b32.xlu1 %v853_v9, %s1731_s13  ;;  %v928_v40 = vpack.c.bf16 %v927_v38, %v927_v38  ;;  %v769_v9 = vmul.f32 %v1950_v55, %v1960_v58 }
  0xdb   : > { %v712_v11 = vpack.c.bf16 %v711_v10, %v711_v10  ;;  %v729_v12 = vpop.f32.mrf.mxu1 }
  0xdc   : > { %v1969_v13 = vmul.f32 %v738_v63, %v729_v12 }
  0xdd   : > { %1538 = vmatmul.msk.bf16.vlgmr.msra.gmra.mxu2 %vm741_vm4, %v712_v11  ;;  %v997_v17 = vpop.permute.xlu0 %996 }
  0xde   : > { %v999_v23 = vmul.f32 %v997_v17, %v1960_v58 }
  0xdf   : > { %v1146_v26 = vpop.permute.xlu1 %1145 }
  0xe0   : > { %v682_v29 = vpop.f32.mrf.mxu0  ;;  %v1002_v30 = vpack.c.bf16 %v999_v23, %v999_v23  ;;  %v1148_v31 = vmul.f32 %v1146_v26, %v1960_v58 }
  0xe2   : > { %v1151_v36 = vpack.c.bf16 %v1148_v31, %v1148_v31  ;;  %1032 = vrot.lane.b32.xlu0 %v1002_v30, %s1732_s16 }
  0xe3   : > { %v731_v37 = vpop.f32.mrf.mxu1 }
  0xe4   : > { %1181 = vrot.lane.b32.xlu1 %v1151_v36, %s1733_s24  ;;  %v1646_v37 = vld [vmem:[%s1888_s11 + $0x2] ss:$0 sm:$0xff] }
  0xe5   : > { %v1223_v43 = vpop.permute.xlu0 %1222 }
  0xe6   : > { %v1225_v44 = vmul.f32 %v1223_v43, %v1148_v31 }
  0xe7   : > { %v1074_v39 = vpop.permute.xlu1 %1073 }
  0xe8   : > { %v1076_v41 = vmul.f32 %v1074_v39, %v999_v23  ;;  %v1226_v45 = vpack.c.bf16 %v1225_v44, %v1225_v44  ;;  %v1647_v44 = vld [vmem:[%s2123_s6 + $0x2] ss:$0 sm:$0xff] }
  0xea   : > { %v1077_v42 = vpack.c.bf16 %v1076_v41, %v1076_v41  ;;  %930 = vrot.lane.b32.xlu0 %v928_v40, %s1731_s13 }
  0xeb   : > { %v1019_v31 = vpop.f32.mrf.mxu1 }
  0xec   : > { %1079 = vrot.lane.b32.xlu1 %v1077_v42, %s1732_s16 }
  0xed   : > { %1543 = vmatmul.msk.bf16.vlgmr.msrb.gmra.mxu2 %vm664_vm1, %v1916_v27  ;;  %v1134_v47 = vpop.permute.xlu0 %1133 }
  0xee   : > { %v1139_v48 = vsub.f32 %v1134_v47, %v1643_v46  ;;  %v2050_v46 = vld [vmem:[#allocation2 + $0x30] sm:$0xff]  ;;  %v2052_v47 = vld [vmem:[#allocation2 + $0x38] sm:$0xff] }
  0xef   : > { %v836_v54 = vpop.permute.xlu1 %835 }
  0xf0   : > { %v1140_v53 = vsel %vm688_vm3, %v1139_v48, -inf  ;;  %v841_v23 = vsub.f32 %v836_v54, %v1644_v18 }
  0xf1   : > { %v1141_v56 = vmul.f32 1.442695, %v1140_v53 }
  0xf2   : > { %v842_v24 = vsel %vm688_vm3, %v841_v23, -inf }
  0xf3   : > { %1663 = vpow2.f32 %v1141_v56  ;;  %v843_v26 = vmul.f32 1.442695, %v842_v24  ;;  %v1021_v36 = vpop.f32.mrf.mxu1 }
  0xf4   : > { %1228 = vrot.lane.b32.xlu1 %v1226_v45, %s1733_s24  ;;  %1665 = vpow2.f32 %v1023_v57  ;;  %v1648_v45 = vld [vmem:[%s2123_s6 + $0x1] ss:$0 sm:$0xff] }
  0xf5   : > { %1667 = vpow2.f32 %v1172_v61 }
  0xf6   : > { %1669 = vpow2.f32 %v843_v26 }
  0xf9   : > { %v1664_v62 = vpop.eup %1663 }
  0xfa   : > { %v2012_v63 = vpop.eup %1665  ;;  %v1149_v1 = vmul.f32 %v1664_v62, %v1965_v8 }
  0xfb   : > { %v2019_v4 = vpop.eup %1667 }
  0xfc   : > { %v1150_v34 = vpack.c.bf16 %v1149_v1, %v1149_v1  ;;  %v1670_v55 = vpop.eup %1669  ;;  %v1264_v26 = vrot.slane %v2019_v4, 7 }
 0x13d   : > { %984 = vperm.xlu2 %1637, %v1930_v35  }
 0x145   : > { %1207 = vperm.xlu2 %1637, %v1645_v50  }
 0x14c   : > { %v884_v60 = vpop.permute.xlu1 %883 }
 0x14d   : > { %878 = vperm.xlu2 %1637, %v2007_v59   ;;  %v889_v25 = vsel %vm745_vm2, %v884_v60, 0 }
 0x14e   : > { %898 = vmatpush.bf16.msrb.mxu3 %v889_v25 }
 0x154   : > { %v1033_v0 = vpop.permute.xlu0 %1032 }
 0x155   : > { %v1038_v35 = vsel %vm745_vm2, %v1033_v0, 0  ;;  %1027 = vperm.xlu2 %1637, %v2012_v63  }
 0x156   : > { %v1182_v2 = vpop.permute.xlu1 %1181  ;;  %1047 = vmatpush.bf16.msra.mxu2 %v1038_v35 }
 0x157   : > { %v1187_v3 = vsel %vm745_vm2, %v1182_v2, 0 }
 0x158   : > { %1196 = vmatpush.bf16.msra.mxu1 %v1187_v3 }
 0x15a   : > { %1257 = vmatpush.bf16.msrb.mxu2 %v1894_v19 }
 0x15b   : > { %1558 = vmatmul.msk.bf16.vlgmr.msra.gmra.mxu1 %vm741_vm4, %v1150_v34  ;;  %v817_v34 = vrot.slane %v1921_v32, 7 }
 0x15c   : > { %v931_v5 = vpop.permute.xlu0 %930 }
 0x15d   : > { %933 = vxpose.xlu0.c.b16.start.end [1/1] (short) (narrow) %v931_v5, 16  ;;  %1176 = vperm.xlu2 %1637, %v2019_v4   ;;  %v966_v5 = vrot.slane %v2007_v59, 7  ;;  %1563 = vpush %v817_v34 }
 0x15e   : > { %v1080_v6 = vpop.permute.xlu1 %1079 }
 0x15f   : > { %1565 = vpush %v966_v5 }
 0x160   : > { %v758_v7 = vpop.f32.mrf.mxu2 }
 0x161   : > { %v759_v10 = vadd.f32 %v758_v7, %v1969_v13  ;;  %v851_v13 = vmul.f32 %v1670_v55, %v1965_v8 }
 0x163   : > { %v2026_v11 = vadd.f32 %v769_v9, %v759_v10  ;;  %v852_v29 = vpack.c.bf16 %v851_v13, %v851_v13 }
 0x166   : > { %v1229_v12 = vpop.permute.xlu1 %1228 }
 0x167   : > { %1638 = vxpose.binary.xlu1.c.b16.start.end [1/2] (short) (narrow) %v1229_v12, %v1080_v6, 16  ;;  %v1115_v12 = vrot.slane %v2012_v63, 7 }
 0x168   : > { %v760_v17 = vpop.f32.mrf.mxu2 }
 0x169   : > { %1567 = vpush %v1115_v12 }
 0x16a   : > { %1569 = vpush %v1264_v26 }
 0x170   : > { %v870_v30 = vpop.f32.mrf.mxu2 }
 0x175   : > { %v790_v28 = vpop.trf.xlu2 }
 0x176   : > { %1539 = vmatmul.msk.bf16.vlgmr.msra.gmra.mxu3 %vm741_vm4, %v790_v28 }
 0x177   : > { %1108 = vmatpush.bf16.msra.mxu3 %v1894_v19 }
 0x178   : > { %v872_v33 = vpop.f32.mrf.mxu2 }
 0x186   : > { %1544 = vmatmul.msk.bf16.vlgmr.msrb.gmra.mxu3 %vm741_vm4, %v852_v29 }
 0x18e   : > { %s1564_s11 = spop %1563 }
 0x18f   : > { %v819_v59 = vstv %s1564_s11 }
 0x190   : > { %v821_v17 = vmul.f32 %v819_v59, %v1896_v20  ;;  %v822_v18 = vmul.f32 %v819_v59, %v1901_v22  ;;  %s1566_s26 = spop %1565 }
 0x191   : > { %v968_v63 = vstv %s1566_s26 }
 0x192   : > { %v971_v20 = vmul.f32 %v968_v63, %v1974_v15 }
 0x197   : > { %v985_v38 = vpop.permute.xlu2 %984 }
 0x198   : > { %v990_v39 = vsub.f32 %v985_v38, %v1646_v37 }
 0x19a   : > { %v991_v40 = vsel %vm688_vm3, %v990_v39, -inf  ;;  %s1568_s19 = spop %1567 }
 0x19b   : > { %v992_v41 = vmul.f32 1.442695, %v991_v40  ;;  %v1117_v29 = vstv %s1568_s19  ;;  %s1570_s20 = spop %1569 }
 0x19c   : > { %v1120_v38 = vmul.f32 %v1117_v29, %v1980_v21  ;;  %v1266_v15 = vstv %s1570_s20 }
 0x19d   : > { %1671 = vpow2.f32 %v992_v41  ;;  %v1268_v39 = vmul.f32 %v1266_v15, %v2050_v46  ;;  %v1269_v21 = vmul.f32 %v1266_v15, %v2052_v47 }
 0x19f   : > { %v1208_v50 = vpop.permute.xlu2 %1207 }
 0x1a0   : > { %v1210_v32 = vmul.f32 %v1208_v50, %v1960_v58 }
 0x1a3   : > { %v1672_v19 = vpop.eup %1671 }
 0x1a4   : > { %v1000_v42 = vmul.f32 %v1672_v19, %v1965_v8  ;;  %v1155_v8 = vpack.c.bf16 %v2052_v47, %v2050_v46 }
 0x1a6   : > { %v1001_v43 = vpack.c.bf16 %v1000_v42, %v1000_v42  ;;  %v1157_v48 = vsel %vm664_vm1, %v1155_v8, 0 }
 0x1a7   : > { %1166 = vmatpush.bf16.xpose.msra.mxu0 %v1157_v48  ;;  %v879_v54 = vpop.permute.xlu2 %878 }
 0x1a8   : > { %1551 = vmatmul.msk.bf16.vlgmr.msra.gmra.mxu2 %vm741_vm4, %v1001_v43  ;;  %v881_v56 = vmul.f32 %v879_v54, %v870_v30  ;;  %v1119_v30 = vmul.f32 %v1117_v29, %v1976_v16 }
 0x1af   : > { %v1028_v1 = vpop.permute.xlu2 %1027 }
 0x1b0   : > { %v1030_v35 = vmul.f32 %v1028_v1, %v1019_v31 }
 0x1b7   : > { %v1177_v4 = vpop.permute.xlu2 %1176 }
 0x1c1   : > { %1058 = vperm.xlu1 %1636, %v1647_v44  }
 0x1cb   : > { %909 = vperm.xlu0 %1635, %v1648_v45  }
 0x1d8   : > { %v2048_v51 = vpop.f32.mrf.mxu1 }
 0x1e0   : > { %v1200_v52 = vpop.f32.mrf.mxu1 }
 0x1f9   : > { %v812_v49 = vpop.f32.mrf.mxu3 }
 0x1fa   : > { %v823_v23 = vadd.f32 %v821_v17, %v812_v49 }
 0x1fc   : > { %825 = vst.msk [vmem:[#allocation2] sm:$0xff] %vm664_vm1, %v823_v23 }
 0x201   : > { %v814_v53 = vpop.f32.mrf.mxu3 }
 0x202   : > { %v824_v24 = vadd.f32 %v822_v18, %v814_v53 }
 0x204   : > { %826 = vst.msk [vmem:[#allocation2 + $0x8] sm:$0xff] %vm664_vm1, %v824_v24 }
 0x209   : > { %v941_v57 = vpop.trf.xlu0  ;;  %v900_v60 = vpop.f32.mrf.mxu3 }
 0x20a   : > { %v901_v25 = vadd.f32 %v900_v60, %v881_v56  ;;  %1546 = vmatmul.msk.bf16.vlgmr.msrb.gmra.mxu0 %vm741_vm4, %v941_v57 }
 0x211   : > { %v902_v61 = vpop.f32.mrf.mxu3 }
 0x213   : > { %v1639_v62 = vpop.trf.xlu1 }
 0x214   : > { %1553 = vmatmul.msk.bf16.vlgmr.msra.gmra.mxu3 %vm741_vm4, %v1639_v62 }
 0x21a   : > { %1557 = vmatmul.msk.bf16.vlgmr.msra.gmra.mxu0 %vm664_vm1, %v1916_v27 }
 0x21b   : > { %v1640_v0 = vpop.trf.xlu1 }
 0x21c   : > { %1560 = vmatmul.msk.bf16.vlgmr.msrb.gmra.mxu2 %vm741_vm4, %v1640_v0 }
 0x22b   : > { %v1049_v2 = vpop.f32.mrf.mxu2 }
 0x22c   : > { %v1050_v3 = vadd.f32 %v1049_v2, %v1030_v35 }
 0x233   : > { %v1051_v6 = vpop.f32.mrf.mxu2  ;;  %v1059_v27 = vpop.permute.xlu1 %1058 }
 0x234   : > { %v1061_v10 = vmul.f32 %v1059_v27, %v1960_v58 }
 0x23d   : > { %v910_v7 = vpop.permute.xlu0 %909 }
 0x23e   : > { %v912_v9 = vmul.f32 %v910_v7, %v1960_v58  ;;  %v970_v58 = vmul.f32 %v968_v63, %v1972_v14 }
 0x240   : > { %914 = vrot.lane.b32.xlu2 %v912_v9, %s1731_s13 }
 0x248   : > { %1063 = vrot.lane.b32.xlu2 %v1061_v10, %s1732_s16 }
 0x250   : > { %1212 = vrot.lane.b32.xlu2 %v1210_v32, %s1733_s24 }
 0x287   : > { %v961_v28 = vpop.f32.mrf.mxu0 }
 0x288   : > { %v972_v55 = vadd.f32 %v970_v58, %v961_v28 }
 0x28a   : > { %974 = vst.msk [vmem:[#allocation2 + $0x10] sm:$0xff] %vm664_vm1, %v972_v55 }
 0x28f   : > { %v963_v22 = vpop.f32.mrf.mxu0 }
 0x290   : > { %v973_v13 = vadd.f32 %v971_v20, %v963_v22 }
 0x292   : > { %975 = vst.msk [vmem:[#allocation2 + $0x18] sm:$0xff] %vm664_vm1, %v973_v13 }
 0x297   : > { %v1168_v31 = vpop.f32.mrf.mxu0  ;;  %v1110_v33 = vpop.f32.mrf.mxu3 }
 0x298   : > { %v1121_v36 = vadd.f32 %v1119_v30, %v1110_v33  ;;  %v1179_v45 = vmul.f32 %v1177_v4, %v1168_v31 }
 0x29a   : > { %v915_v37 = vpop.permute.xlu2 %914  ;;  %1123 = vst.msk [vmem:[#allocation2 + $0x20] sm:$0xff] %vm664_vm1, %v1121_v36  ;;  %v1199_v8 = vadd.f32 %v2048_v51, %v1179_v45 }
 0x29b   : > { %v917_v14 = vadd.f32 %v915_v37, %v901_v25 }
 0x29d   : > { %1275 = vrot.lane.b32.xlu2 %v917_v14, %s1734_s12 }
 0x29f   : > { %v1170_v40 = vpop.f32.mrf.mxu0  ;;  %v1112_v41 = vpop.f32.mrf.mxu3 }
 0x2a0   : > { %v1122_v19 = vadd.f32 %v1120_v38, %v1112_v41  ;;  %v1259_v42 = vpop.f32.mrf.mxu2 }
 0x2a1   : > { %v1270_v16 = vadd.f32 %v1268_v39, %v1259_v42 }
 0x2a2   : > { %v1064_v43 = vpop.permute.xlu2 %1063  ;;  %1124 = vst.msk [vmem:[#allocation2 + $0x28] sm:$0xff] %vm664_vm1, %v1122_v19 }
 0x2a3   : > { %v1066_v44 = vadd.f32 %v1064_v43, %v1050_v3  ;;  %1272 = vst.msk [vmem:[#allocation2 + $0x30] sm:$0xff] %vm664_vm1, %v1270_v16 }
 0x2a5   : > { %1279 = vrot.lane.b32.xlu0 %v1066_v44, %s1735_s3 }
 0x2a8   : > { %v1261_v52 = vpop.f32.mrf.mxu2 }
 0x2a9   : > { %v1271_v46 = vadd.f32 %v1269_v21, %v1261_v52 }
 0x2aa   : > { %v1213_v48 = vpop.permute.xlu2 %1212 }
 0x2ab   : > { %v1215_v49 = vadd.f32 %v1213_v48, %v1199_v8  ;;  %1273 = vst.msk [vmem:[#allocation2 + $0x38] sm:$0xff] %vm664_vm1, %v1271_v46 }
 0x2ad   : > { %1283 = vrot.lane.b32.xlu2 %v1215_v49, %s1736_s4 }
 0x2f7   : > { %v1276_v50 = vpop.permute.xlu2 %1275 }
 0x2f8   : > { %v1286_v53 = vsel %vm664_vm1, %v2026_v11, %v1276_v50 }
 0x307   : > { %v1284_v56 = vpop.permute.xlu2 %1283 }
 0x317   : > { %v1280_v54 = vpop.permute.xlu0 %1279 }
 0x318   : > { %v1288_v47 = vsel %vm1287_vm5, %v1286_v53, %v1280_v54 }
 0x319   : > { %v1290_v57 = vsel %vm1289_vm6, %v1288_v47, %v1284_v56 }
 0x31a   : > { %v1291_v51 = vpack.c.bf16 %v1290_v57, %v1290_v57 }
 0x31c   : > { %1293 = vst.msk [vmem:[%s646_s21] sm:$0xf] %vm1292_vm7, %v1291_v51 }
 0x31d PF: > { %s17_s30 = sadd.s32 1, %s1727_s30   ;;  %s2130_s24 = smov %s1707_s25 }
 0x31e   : > { %p14_p13 = scmp.ge.s32.totalorder %s17_s30, 6   ;;  %s2131_s25 = smov %s1832_s15 }
 0x31f   : > { %s2132_s26 = smov %s1719_s28  ;;  %s2133_s27 = smov %s1723_s29 }
 0x320   : > { %s2134_s28 = smov %s2137_s8  ;;  %s2135_s29 = smov %s2141_s9 }
 0x321   :  { %16 = sbr.rel (!%p14_p13) target bundleno = 7 (0x7), region = 240 }

</bundles_post_ra>
